<compile_context>
chip_gen: v7x
topology: tpu7x:2x2x1
jax: 0.10.0
libtpu: 0.0.40
codegen_flags: <defaults>
</compile_context>

<pallas_src>
import functools

import jax
import jax.numpy as jnp
from jax import lax
from jax.experimental import pallas as pl
from jax.experimental.pallas import tpu as pltpu


# ----------------------------------------------------------------------------
# One-time probe: does pltpu.roll lower at this (sublane, lane) shape and
# does it rotate in the same direction as jnp.roll / torch.roll?
#   +1 : pltpu.roll(x, j) == jnp.roll(x, j)      (use it directly)
#   -1 : reversed direction                      (use shift = D - j)
#    0 : unsupported / unexpected at this width  (slice-concat fallback)
# ----------------------------------------------------------------------------
_ROLL_MODE_CACHE = {}


def _probe_roll_mode(rows, width):
    key = (rows, width)
    if key in _ROLL_MODE_CACHE:
        return _ROLL_MODE_CACHE[key]
    mode = 0
    try:
        x = jnp.arange(rows * width, dtype=jnp.float32).reshape(rows, width)

        def k(x_ref, o_ref):
            o_ref[...] = pltpu.roll(x_ref[...], shift=1, axis=1)

        y = pl.pallas_call(
            k, out_shape=jax.ShapeDtypeStruct((rows, width), jnp.float32))(x)
        y = jax.block_until_ready(y)
        if bool(jnp.array_equal(y, jnp.roll(x, 1, axis=-1))):
            mode = 1
        elif bool(jnp.array_equal(y, jnp.roll(x, -1, axis=-1))):
            mode = -1
    except Exception:
        mode = 0
    _ROLL_MODE_CACHE[key] = mode
    return mode


# ----------------------------------------------------------------------------
# DPFP feature map (inside-kernel helper, static nu).
# torch.roll(x, j, -1)[..., i] == x[..., (i - j) mod D]  -> right rotation.
# ----------------------------------------------------------------------------
def _rot_right(x2, j, roll_mode):
    D = x2.shape[-1]
    j = j % D
    if j == 0:
        return x2
    axis = x2.ndim - 1
    if roll_mode == 1:
        return pltpu.roll(x2, shift=j, axis=axis)
    if roll_mode == -1:
        return pltpu.roll(x2, shift=D - j, axis=axis)
    # Fallback: explicit right rotation via two lane slices.
    return jnp.concatenate([x2[:, D - j:], x2[:, :D - j]], axis=-1)


def _dpfp_feat(x, nu, roll_mode):
    """DPFP feature map on an (n, d) tile -> (n, 2 * nu * d)."""
    x2 = jnp.concatenate([jnp.maximum(x, 0.0), jnp.maximum(-x, 0.0)], axis=-1)
    feats = [x2 * _rot_right(x2, j, roll_mode) for j in range(1, nu + 1)]
    return feats[0] if nu == 1 else jnp.concatenate(feats, axis=-1)


# ----------------------------------------------------------------------------
# Fused forward kernel: one grid step == one batch element, all heads.
# ----------------------------------------------------------------------------
def _fused_dpfp_kernel(x_ref, wqkv_ref, wbeta_ref, bbeta_ref, wout_ref,
                       bout_ref, w_ref, o_ref, wn_ref,
                       *, heads, dim_head, nu, scale, roll_mode):
    d = dim_head
    inner = heads * d
    bf16 = jnp.bfloat16

    x = x_ref[0]                                   # (n, dim) f32
    xb = x.astype(bf16)

    # Projections: to_qkv has no bias, to_beta has a bias (bf16 MXU, f32 acc).
    qkv = jnp.dot(xb, wqkv_ref[...].astype(bf16),
                  preferred_element_type=jnp.float32)            # (n, 3*inner)
    beta = jnp.dot(xb, wbeta_ref[...].astype(bf16),
                   preferred_element_type=jnp.float32) + bbeta_ref[...]

    head_outs = []
    for hi in range(heads):                         # unrolled, heads is static
        q = qkv[:, hi * d:(hi + 1) * d]                          # (n, d)
        k = qkv[:, inner + hi * d:inner + (hi + 1) * d]          # (n, d)
        v = qkv[:, 2 * inner + hi * d:2 * inner + (hi + 1) * d]  # (n, d)
        b_h = beta[:, hi:hi + 1]                                 # (n, 1)
        W = w_ref[0, hi]                                         # (s, d) f32

        qf = _dpfp_feat(q, nu, roll_mode)                        # (n, s)
        kf = _dpfp_feat(k, nu, roll_mode)                        # (n, s)
        # Normalisation via EUP reciprocal (eps guards all-zero rows);
        # q-side normalisation is folded into the final scale multiply.
        inv_k = pl.reciprocal(jnp.sum(kf, -1, keepdims=True) + 1e-12,
                              approx=True)
        inv_q = pl.reciprocal(jnp.sum(qf, -1, keepdims=True) + 1e-12,
                              approx=True)
        kf = kf * inv_k

        kf_b = kf.astype(bf16)
        vo = jnp.dot(kf_b, W.astype(bf16),
                     preferred_element_type=jnp.float32)         # (n, d)
        dv = b_h * (v - vo)                                      # (n, d) f32
        w_upd = lax.dot_general(kf_b, dv.astype(bf16),
                                (((0,), (0,)), ((), ())),
                                preferred_element_type=jnp.float32)  # (s, d)
        Wn = W + w_upd                                           # f32
        wn_ref[0, hi] = Wn

        out_h = jnp.dot(qf.astype(bf16), Wn.astype(bf16),
                        preferred_element_type=jnp.float32)      # (n, d)
        head_outs.append(out_h * (inv_q * scale))

    out_inner = jnp.concatenate(head_outs, axis=-1)              # (n, inner)
    o_ref[0] = (jnp.dot(out_inner.astype(bf16), wout_ref[...].astype(bf16),
                        preferred_element_type=jnp.float32)
                + bout_ref[...])


def dpfp_attention_forward(x, W, params, *, heads, dim_head, nu):
    """Full DPFPAttention forward (eval mode, mask=None) -> (out, W_new)."""
    b, n, dim = x.shape
    inner = heads * dim_head
    s = 2 * nu * dim_head
    assert W.shape == (b, heads, s, dim_head)
    scale = 1.0 / (dim_head ** 0.5)
    roll_mode = _probe_roll_mode(n, 2 * dim_head)

    kernel = functools.partial(
        _fused_dpfp_kernel, heads=heads, dim_head=dim_head, nu=nu,
        scale=scale, roll_mode=roll_mode)

    out, Wn = pl.pallas_call(
        kernel,
        out_shape=(
            jax.ShapeDtypeStruct((b, n, dim), jnp.float32),
            jax.ShapeDtypeStruct((b, heads, s, dim_head), jnp.float32),
        ),
        grid_spec=pltpu.PrefetchScalarGridSpec(
            num_scalar_prefetch=0,
            grid=(b,),
            in_specs=[
                pl.BlockSpec((1, n, dim), lambda i: (i, 0, 0)),           # x
                pl.BlockSpec((dim, 3 * inner), lambda i: (0, 0)),         # w_qkv
                pl.BlockSpec((dim, heads), lambda i: (0, 0)),             # w_beta
                pl.BlockSpec((1, heads), lambda i: (0, 0)),               # b_beta
                pl.BlockSpec((inner, dim), lambda i: (0, 0)),             # w_out
                pl.BlockSpec((1, dim), lambda i: (0, 0)),                 # b_out
                pl.BlockSpec((1, heads, s, dim_head),
                             lambda i: (i, 0, 0, 0)),                     # W
            ],
            out_specs=[
                pl.BlockSpec((1, n, dim), lambda i: (i, 0, 0)),           # out
                pl.BlockSpec((1, heads, s, dim_head),
                             lambda i: (i, 0, 0, 0)),                     # Wn
            ],
        ),
        # In-place fast-weight update: W (input 6) aliases Wn (output 1).
        input_output_aliases={6: 1},
        compiler_params=pltpu.CompilerParams(
            dimension_semantics=("parallel",)),
    )(x, params["w_qkv"], params["w_beta"], params["b_beta"],
      params["w_out"], params["b_out"], W)
    return out, Wn


# ----------------------------------------------------------------------------
# Pure-JAX f32 reference (mirrors the PyTorch module) for correctness check.
# ----------------------------------------------------------------------------
def _dpfp_ref(x, nu):
    x = jnp.concatenate([jax.nn.relu(x), jax.nn.relu(-x)], axis=-1)
    x_rolled = jnp.concatenate(
        [jnp.roll(x, shift=j, axis=-1) for j in range(1, nu + 1)], axis=-1)
    x_repeat = jnp.concatenate([x] * nu, axis=-1)
    return x_repeat * x_rolled


def dpfp_attention_ref(x, W, params, *, heads, dim_head, nu):
    b, n, dim = x.shape
    inner = heads * dim_head
    scale = 1.0 / (dim_head ** 0.5)
    qkv = x @ params["w_qkv"]
    beta = x @ params["w_beta"] + params["b_beta"]
    q, k, v = jnp.split(qkv, 3, axis=-1)

    def to_bhnd(t, d):
        return t.reshape(b, n, heads, d).transpose(0, 2, 1, 3)

    q, k, v = to_bhnd(q, dim_head), to_bhnd(k, dim_head), to_bhnd(v, dim_head)
    beta = to_bhnd(beta, 1)
    q, k = _dpfp_ref(q, nu), _dpfp_ref(k, nu)
    q = q / jnp.sum(q, -1, keepdims=True)
    k = k / jnp.sum(k, -1, keepdims=True)
    vo = jnp.einsum('bhsd,bhns->bhnd', W, k)
    dv = beta * (v - vo)
    Wn = W + jnp.einsum('bhnd,bhns->bhsd', dv, k)
    out = jnp.einsum('bhsd,bhns->bhnd', Wn, q) * scale
    out = out.transpose(0, 2, 1, 3).reshape(b, n, inner)
    out = out @ params["w_out"] + params["b_out"]
    return out, Wn


if __name__ == "__main__":
    # Small shapes consistent with the module.
    b, n, dim = 2, 8, 32
    heads, dim_head, nu = 4, 16, 1
    inner = heads * dim_head
    s = 2 * nu * dim_head

    key = jax.random.PRNGKey(0)
    k_x, k_w, k_qkv, k_bw, k_bb, k_ow, k_ob = jax.random.split(key, 7)

    x = jax.random.normal(k_x, (b, n, dim), dtype=jnp.float32)
    W0 = 0.05 * jax.random.normal(k_w, (b, heads, s, dim_head), jnp.float32)

    params = {
        "w_qkv": 0.05 * jax.random.normal(k_qkv, (dim, 3 * inner), jnp.float32),
        "w_beta": 0.05 * jax.random.normal(k_bw, (dim, heads), jnp.float32),
        "b_beta": 0.05 * jax.random.normal(k_bb, (1, heads), jnp.float32),
        "w_out": 0.05 * jax.random.normal(k_ow, (inner, dim), jnp.float32),
        "b_out": 0.05 * jax.random.normal(k_ob, (1, dim), jnp.float32),
    }

    # Compute the f32 reference first (W0's buffer may be donated by the
    # aliased pallas_call afterwards).
    out_ref, W_ref = dpfp_attention_ref(
        x, W0, params, heads=heads, dim_head=dim_head, nu=nu)
    out_ref = jax.block_until_ready(out_ref)
    W_ref = jax.block_until_ready(W_ref)

    out, W_new = dpfp_attention_forward(
        x, W0, params, heads=heads, dim_head=dim_head, nu=nu)
    out = jax.block_until_ready(out)
    W_new = jax.block_until_ready(W_new)

    # Kernel uses bf16 MXU inputs + approx reciprocals -> compare against the
    # f32 reference with a correspondingly loose tolerance.
    assert jnp.allclose(out, out_ref, atol=1e-2, rtol=1e-2), "output mismatch"
    assert jnp.allclose(W_new, W_ref, atol=1e-2, rtol=1e-2), "W mismatch"

    print("KERNEL_OK")
</pallas_src>

<mosaic_0001>
module attributes {stable_mosaic.version = 11 : i64} {
  func.func @k(%arg0: memref<8x32xf32, #tpu.memory_space<vmem>>, %arg1: memref<8x32xf32, #tpu.memory_space<vmem>>) attributes {dimension_semantics = [], scalar_prefetch = 0 : i64, scratch_operands = 0 : i64, tpu.core_type = #tpu.core_type<tc>} {
    %c0 = arith.constant 0 : index
    %c0_0 = arith.constant 0 : index
    %0 = vector.load %arg0[%c0, %c0_0] : memref<8x32xf32, #tpu.memory_space<vmem>>, vector<8x32xf32>
    %c1_i32 = arith.constant 1 : i32
    %1 = tpu.dynamic_rotate %0 by %c1_i32 dim 1 : vector<8x32xf32>, i32 -> vector<8x32xf32>
    %c0_1 = arith.constant 0 : index
    %c0_2 = arith.constant 0 : index
    %2 = vector.load %arg1[%c0_1, %c0_2] : memref<8x32xf32, #tpu.memory_space<vmem>>, vector<8x32xf32>
    tpu.vector_store %arg1[%c0_1, %c0_2], %1 {strides = array<i32>} : memref<8x32xf32, #tpu.memory_space<vmem>>, vector<8x32xf32>,
    return
  }
}

module attributes {stable_mosaic.version = 11 : i64} {
  func.func @_fused_dpfp_kernel(%arg0: i32, %arg1: memref<1x8x32xf32, #tpu.memory_space<vmem>>, %arg2: memref<32x192xf32, #tpu.memory_space<vmem>>, %arg3: memref<32x4xf32, #tpu.memory_space<vmem>>, %arg4: memref<1x4xf32, #tpu.memory_space<vmem>>, %arg5: memref<64x32xf32, #tpu.memory_space<vmem>>, %arg6: memref<1x32xf32, #tpu.memory_space<vmem>>, %arg7: memref<1x4x32x16xf32, #tpu.memory_space<vmem>>, %arg8: memref<1x8x32xf32, #tpu.memory_space<vmem>>, %arg9: memref<1x4x32x16xf32, #tpu.memory_space<vmem>>) attributes {dimension_semantics = [#tpu.dimension_semantics<parallel>], iteration_bounds = array<i64: 2>, scalar_prefetch = 0 : i64, scratch_operands = 0 : i64, tpu.core_type = #tpu.core_type<tc>, window_params = [{transform_indices = @transform_0, window_bounds = array<i64: 1, 8, 32>}, {pipeline_mode = #tpu.pipeline_mode<synchronous>, transform_indices = @transform_1, window_bounds = array<i64: 32, 192>}, {pipeline_mode = #tpu.pipeline_mode<synchronous>, transform_indices = @transform_2, window_bounds = array<i64: 32, 4>}, {pipeline_mode = #tpu.pipeline_mode<synchronous>, transform_indices = @transform_3, window_bounds = array<i64: 1, 4>}, {pipeline_mode = #tpu.pipeline_mode<synchronous>, transform_indices = @transform_4, window_bounds = array<i64: 64, 32>}, {pipeline_mode = #tpu.pipeline_mode<synchronous>, transform_indices = @transform_5, window_bounds = array<i64: 1, 32>}, {transform_indices = @transform_6, window_bounds = array<i64: 1, 4, 32, 16>}, {transform_indices = @transform_7, window_bounds = array<i64: 1, 8, 32>}, {transform_indices = @transform_8, window_bounds = array<i64: 1, 4, 32, 16>}]} {
    %c0 = arith.constant 0 : index
    %c0_0 = arith.constant 0 : index
    %c0_1 = arith.constant 0 : index
    %0 = vector.load %arg1[%c0, %c0_0, %c0_1] : memref<1x8x32xf32, #tpu.memory_space<vmem>>, vector<1x8x32xf32>
    %1 = vector.shape_cast %0 : vector<1x8x32xf32> to vector<8x32xf32>
    %2 = arith.truncf %1 : vector<8x32xf32> to vector<8x32xbf16>
    %c0_2 = arith.constant 0 : index
    %c0_3 = arith.constant 0 : index
    %3 = vector.load %arg2[%c0_2, %c0_3] : memref<32x192xf32, #tpu.memory_space<vmem>>, vector<32x192xf32>
    %4 = arith.truncf %3 : vector<32x192xf32> to vector<32x192xbf16>
    %cst = arith.constant dense<0.000000e+00> : vector<8x192xf32>
    %5 = tpu.matmul %2, %4, %cst {dimension_numbers = #tpu.dot_dimension_numbers<[1], [0], [0], [1], [0, 0, 1, 1], [], []>} : vector<8x32xbf16>, vector<32x192xbf16>, vector<8x192xf32> -> vector<8x192xf32>
    %c0_4 = arith.constant 0 : index
    %c0_5 = arith.constant 0 : index
    %6 = vector.load %arg3[%c0_4, %c0_5] : memref<32x4xf32, #tpu.memory_space<vmem>>, vector<32x4xf32>
    %7 = arith.truncf %6 : vector<32x4xf32> to vector<32x4xbf16>
    %cst_6 = arith.constant dense<0.000000e+00> : vector<8x4xf32>
    %8 = tpu.matmul %2, %7, %cst_6 {dimension_numbers = #tpu.dot_dimension_numbers<[1], [0], [0], [1], [0, 0, 1, 1], [], []>} : vector<8x32xbf16>, vector<32x4xbf16>, vector<8x4xf32> -> vector<8x4xf32>
    %c0_7 = arith.constant 0 : index
    %c0_8 = arith.constant 0 : index
    %9 = vector.load %arg4[%c0_7, %c0_8] : memref<1x4xf32, #tpu.memory_space<vmem>>, vector<1x4xf32>
    %10 = vector.broadcast %9 : vector<1x4xf32> to vector<8x4xf32>
    %11 = arith.addf %8, %10 : vector<8x4xf32>
    %12 = vector.extract_strided_slice %5 {offsets = [0, 0], sizes = [8, 16], strides = [1, 1]} : vector<8x192xf32> to vector<8x16xf32>
    %13 = vector.extract_strided_slice %5 {offsets = [0, 64], sizes = [8, 16], strides = [1, 1]} : vector<8x192xf32> to vector<8x16xf32>
    %14 = vector.extract_strided_slice %5 {offsets = [0, 128], sizes = [8, 16], strides = [1, 1]} : vector<8x192xf32> to vector<8x16xf32>
    %15 = vector.extract_strided_slice %11 {offsets = [0, 0], sizes = [8, 1], strides = [1, 1]} : vector<8x4xf32> to vector<8x1xf32>
    %c0_9 = arith.constant 0 : index
    %c0_10 = arith.constant 0 : index
    %c0_11 = arith.constant 0 : index
    %c0_12 = arith.constant 0 : index
    %16 = vector.load %arg7[%c0_9, %c0_10, %c0_11, %c0_12] : memref<1x4x32x16xf32, #tpu.memory_space<vmem>>, vector<1x1x32x16xf32>
    %17 = vector.shape_cast %16 : vector<1x1x32x16xf32> to vector<32x16xf32>
    %cst_13 = arith.constant 0.000000e+00 : f32
    %18 = vector.broadcast %cst_13 : f32 to vector<8x16xf32>
    %19 = arith.maximumf %12, %18 : vector<8x16xf32>
    %cst_14 = arith.constant 0.000000e+00 : f32
    %20 = vector.broadcast %cst_14 : f32 to vector<8x16xf32>
    %21 = arith.subf %20, %12 : vector<8x16xf32>
    %cst_15 = arith.constant 0.000000e+00 : f32
    %22 = vector.broadcast %cst_15 : f32 to vector<8x16xf32>
    %23 = arith.maximumf %21, %22 : vector<8x16xf32>
    %24 = tpu.concatenate %19, %23 in 1 : vector<8x16xf32>, vector<8x16xf32> -> vector<8x32xf32>
    %25 = vector.extract_strided_slice %24 {offsets = [0, 31], sizes = [8, 1], strides = [1, 1]} : vector<8x32xf32> to vector<8x1xf32>
    %26 = vector.extract_strided_slice %24 {offsets = [0, 0], sizes = [8, 31], strides = [1, 1]} : vector<8x32xf32> to vector<8x31xf32>
    %27 = tpu.concatenate %25, %26 in 1 : vector<8x1xf32>, vector<8x31xf32> -> vector<8x32xf32>
    %28 = arith.mulf %24, %27 : vector<8x32xf32>
    %cst_16 = arith.constant 0.000000e+00 : f32
    %29 = vector.broadcast %cst_16 : f32 to vector<8x16xf32>
    %30 = arith.maximumf %13, %29 : vector<8x16xf32>
    %cst_17 = arith.constant 0.000000e+00 : f32
    %31 = vector.broadcast %cst_17 : f32 to vector<8x16xf32>
    %32 = arith.subf %31, %13 : vector<8x16xf32>
    %cst_18 = arith.constant 0.000000e+00 : f32
    %33 = vector.broadcast %cst_18 : f32 to vector<8x16xf32>
    %34 = arith.maximumf %32, %33 : vector<8x16xf32>
    %35 = tpu.concatenate %30, %34 in 1 : vector<8x16xf32>, vector<8x16xf32> -> vector<8x32xf32>
    %36 = vector.extract_strided_slice %35 {offsets = [0, 31], sizes = [8, 1], strides = [1, 1]} : vector<8x32xf32> to vector<8x1xf32>
    %37 = vector.extract_strided_slice %35 {offsets = [0, 0], sizes = [8, 31], strides = [1, 1]} : vector<8x32xf32> to vector<8x31xf32>
    %38 = tpu.concatenate %36, %37 in 1 : vector<8x1xf32>, vector<8x31xf32> -> vector<8x32xf32>
    %39 = arith.mulf %35, %38 : vector<8x32xf32>
    %cst_19 = arith.constant dense<0.000000e+00> : vector<8xf32>
    %40 = vector.multi_reduction <add>, %39, %cst_19 [1] : vector<8x32xf32> to vector<8xf32>
    %41 = vector.shape_cast %40 : vector<8xf32> to vector<8x1xf32>
    %cst_20 = arith.constant 9.99999996E-13 : f32
    %42 = vector.broadcast %cst_20 : f32 to vector<8x1xf32>
    %43 = arith.addf %41, %42 : vector<8x1xf32>
    %44 = tpu.reciprocal %43 {approx = true} : vector<8x1xf32> -> vector<8x1xf32>
    %cst_21 = arith.constant dense<0.000000e+00> : vector<8xf32>
    %45 = vector.multi_reduction <add>, %28, %cst_21 [1] : vector<8x32xf32> to vector<8xf32>
    %46 = vector.shape_cast %45 : vector<8xf32> to vector<8x1xf32>
    %cst_22 = arith.constant 9.99999996E-13 : f32
    %47 = vector.broadcast %cst_22 : f32 to vector<8x1xf32>
    %48 = arith.addf %46, %47 : vector<8x1xf32>
    %49 = tpu.reciprocal %48 {approx = true} : vector<8x1xf32> -> vector<8x1xf32>
    %50 = vector.broadcast %44 : vector<8x1xf32> to vector<8x32xf32>
    %51 = arith.mulf %39, %50 : vector<8x32xf32>
    %52 = arith.truncf %51 : vector<8x32xf32> to vector<8x32xbf16>
    %53 = arith.truncf %17 : vector<32x16xf32> to vector<32x16xbf16>
    %cst_23 = arith.constant dense<0.000000e+00> : vector<8x16xf32>
    %54 = tpu.matmul %52, %53, %cst_23 {dimension_numbers = #tpu.dot_dimension_numbers<[1], [0], [0], [1], [0, 0, 1, 1], [], []>} : vector<8x32xbf16>, vector<32x16xbf16>, vector<8x16xf32> -> vector<8x16xf32>
    %55 = arith.subf %14, %54 : vector<8x16xf32>
    %56 = vector.broadcast %15 : vector<8x1xf32> to vector<8x16xf32>
    %57 = arith.mulf %56, %55 : vector<8x16xf32>
    %58 = arith.truncf %57 : vector<8x16xf32> to vector<8x16xbf16>
    %cst_24 = arith.constant dense<0.000000e+00> : vector<32x16xf32>
    %59 = tpu.matmul %52, %58, %cst_24 {dimension_numbers = #tpu.dot_dimension_numbers<[0], [0], [1], [1], [0, 1, 1, 1], [], []>} : vector<8x32xbf16>, vector<8x16xbf16>, vector<32x16xf32> -> vector<32x16xf32>
    %60 = arith.addf %17, %59 : vector<32x16xf32>
    %c0_25 = arith.constant 0 : index
    %c0_26 = arith.constant 0 : index
    %c0_27 = arith.constant 0 : index
    %c0_28 = arith.constant 0 : index
    %61 = vector.load %arg9[%c0_25, %c0_26, %c0_27, %c0_28] : memref<1x4x32x16xf32, #tpu.memory_space<vmem>>, vector<1x1x32x16xf32>
    %62 = vector.shape_cast %61 : vector<1x1x32x16xf32> to vector<32x16xf32>
    %63 = vector.shape_cast %60 : vector<32x16xf32> to vector<1x1x32x16xf32>
    tpu.vector_store %arg9[%c0_25, %c0_26, %c0_27, %c0_28], %63 {strides = array<i32>} : memref<1x4x32x16xf32, #tpu.memory_space<vmem>>, vector<1x1x32x16xf32>,
    %64 = arith.truncf %28 : vector<8x32xf32> to vector<8x32xbf16>
    %65 = arith.truncf %60 : vector<32x16xf32> to vector<32x16xbf16>
    %cst_29 = arith.constant dense<0.000000e+00> : vector<8x16xf32>
    %66 = tpu.matmul %64, %65, %cst_29 {dimension_numbers = #tpu.dot_dimension_numbers<[1], [0], [0], [1], [0, 0, 1, 1], [], []>} : vector<8x32xbf16>, vector<32x16xbf16>, vector<8x16xf32> -> vector<8x16xf32>
    %cst_30 = arith.constant 2.500000e-01 : f32
    %67 = vector.broadcast %cst_30 : f32 to vector<8x1xf32>
    %68 = arith.mulf %49, %67 : vector<8x1xf32>
    %69 = vector.broadcast %68 : vector<8x1xf32> to vector<8x16xf32>
    %70 = arith.mulf %66, %69 : vector<8x16xf32>
    %71 = vector.extract_strided_slice %5 {offsets = [0, 16], sizes = [8, 16], strides = [1, 1]} : vector<8x192xf32> to vector<8x16xf32>
    %72 = vector.extract_strided_slice %5 {offsets = [0, 80], sizes = [8, 16], strides = [1, 1]} : vector<8x192xf32> to vector<8x16xf32>
    %73 = vector.extract_strided_slice %5 {offsets = [0, 144], sizes = [8, 16], strides = [1, 1]} : vector<8x192xf32> to vector<8x16xf32>
    %74 = vector.extract_strided_slice %11 {offsets = [0, 1], sizes = [8, 1], strides = [1, 1]} : vector<8x4xf32> to vector<8x1xf32>
    %c0_31 = arith.constant 0 : index
    %c1 = arith.constant 1 : index
    %c0_32 = arith.constant 0 : index
    %c0_33 = arith.constant 0 : index
    %75 = vector.load %arg7[%c0_31, %c1, %c0_32, %c0_33] : memref<1x4x32x16xf32, #tpu.memory_space<vmem>>, vector<1x1x32x16xf32>
    %76 = vector.shape_cast %75 : vector<1x1x32x16xf32> to vector<32x16xf32>
    %cst_34 = arith.constant 0.000000e+00 : f32
    %77 = vector.broadcast %cst_34 : f32 to vector<8x16xf32>
    %78 = arith.maximumf %71, %77 : vector<8x16xf32>
    %cst_35 = arith.constant 0.000000e+00 : f32
    %79 = vector.broadcast %cst_35 : f32 to vector<8x16xf32>
    %80 = arith.subf %79, %71 : vector<8x16xf32>
    %cst_36 = arith.constant 0.000000e+00 : f32
    %81 = vector.broadcast %cst_36 : f32 to vector<8x16xf32>
    %82 = arith.maximumf %80, %81 : vector<8x16xf32>
    %83 = tpu.concatenate %78, %82 in 1 : vector<8x16xf32>, vector<8x16xf32> -> vector<8x32xf32>
    %84 = vector.extract_strided_slice %83 {offsets = [0, 31], sizes = [8, 1], strides = [1, 1]} : vector<8x32xf32> to vector<8x1xf32>
    %85 = vector.extract_strided_slice %83 {offsets = [0, 0], sizes = [8, 31], strides = [1, 1]} : vector<8x32xf32> to vector<8x31xf32>
    %86 = tpu.concatenate %84, %85 in 1 : vector<8x1xf32>, vector<8x31xf32> -> vector<8x32xf32>
    %87 = arith.mulf %83, %86 : vector<8x32xf32>
    %cst_37 = arith.constant 0.000000e+00 : f32
    %88 = vector.broadcast %cst_37 : f32 to vector<8x16xf32>
    %89 = arith.maximumf %72, %88 : vector<8x16xf32>
    %cst_38 = arith.constant 0.000000e+00 : f32
    %90 = vector.broadcast %cst_38 : f32 to vector<8x16xf32>
    %91 = arith.subf %90, %72 : vector<8x16xf32>
    %cst_39 = arith.constant 0.000000e+00 : f32
    %92 = vector.broadcast %cst_39 : f32 to vector<8x16xf32>
    %93 = arith.maximumf %91, %92 : vector<8x16xf32>
    %94 = tpu.concatenate %89, %93 in 1 : vector<8x16xf32>, vector<8x16xf32> -> vector<8x32xf32>
    %95 = vector.extract_strided_slice %94 {offsets = [0, 31], sizes = [8, 1], strides = [1, 1]} : vector<8x32xf32> to vector<8x1xf32>
    %96 = vector.extract_strided_slice %94 {offsets = [0, 0], sizes = [8, 31], strides = [1, 1]} : vector<8x32xf32> to vector<8x31xf32>
    %97 = tpu.concatenate %95, %96 in 1 : vector<8x1xf32>, vector<8x31xf32> -> vector<8x32xf32>
    %98 = arith.mulf %94, %97 : vector<8x32xf32>
    %cst_40 = arith.constant dense<0.000000e+00> : vector<8xf32>
    %99 = vector.multi_reduction <add>, %98, %cst_40 [1] : vector<8x32xf32> to vector<8xf32>
    %100 = vector.shape_cast %99 : vector<8xf32> to vector<8x1xf32>
    %cst_41 = arith.constant 9.99999996E-13 : f32
    %101 = vector.broadcast %cst_41 : f32 to vector<8x1xf32>
    %102 = arith.addf %100, %101 : vector<8x1xf32>
    %103 = tpu.reciprocal %102 {approx = true} : vector<8x1xf32> -> vector<8x1xf32>
    %cst_42 = arith.constant dense<0.000000e+00> : vector<8xf32>
    %104 = vector.multi_reduction <add>, %87, %cst_42 [1] : vector<8x32xf32> to vector<8xf32>
    %105 = vector.shape_cast %104 : vector<8xf32> to vector<8x1xf32>
    %cst_43 = arith.constant 9.99999996E-13 : f32
    %106 = vector.broadcast %cst_43 : f32 to vector<8x1xf32>
    %107 = arith.addf %105, %106 : vector<8x1xf32>
    %108 = tpu.reciprocal %107 {approx = true} : vector<8x1xf32> -> vector<8x1xf32>
    %109 = vector.broadcast %103 : vector<8x1xf32> to vector<8x32xf32>
    %110 = arith.mulf %98, %109 : vector<8x32xf32>
    %111 = arith.truncf %110 : vector<8x32xf32> to vector<8x32xbf16>
    %112 = arith.truncf %76 : vector<32x16xf32> to vector<32x16xbf16>
    %cst_44 = arith.constant dense<0.000000e+00> : vector<8x16xf32>
    %113 = tpu.matmul %111, %112, %cst_44 {dimension_numbers = #tpu.dot_dimension_numbers<[1], [0], [0], [1], [0, 0, 1, 1], [], []>} : vector<8x32xbf16>, vector<32x16xbf16>, vector<8x16xf32> -> vector<8x16xf32>
    %114 = arith.subf %73, %113 : vector<8x16xf32>
    %115 = vector.broadcast %74 : vector<8x1xf32> to vector<8x16xf32>
    %116 = arith.mulf %115, %114 : vector<8x16xf32>
    %117 = arith.truncf %116 : vector<8x16xf32> to vector<8x16xbf16>
    %cst_45 = arith.constant dense<0.000000e+00> : vector<32x16xf32>
    %118 = tpu.matmul %111, %117, %cst_45 {dimension_numbers = #tpu.dot_dimension_numbers<[0], [0], [1], [1], [0, 1, 1, 1], [], []>} : vector<8x32xbf16>, vector<8x16xbf16>, vector<32x16xf32> -> vector<32x16xf32>
    %119 = arith.addf %76, %118 : vector<32x16xf32>
    %c0_46 = arith.constant 0 : index
    %c1_47 = arith.constant 1 : index
    %c0_48 = arith.constant 0 : index
    %c0_49 = arith.constant 0 : index
    %120 = vector.load %arg9[%c0_46, %c1_47, %c0_48, %c0_49] : memref<1x4x32x16xf32, #tpu.memory_space<vmem>>, vector<1x1x32x16xf32>
    %121 = vector.shape_cast %120 : vector<1x1x32x16xf32> to vector<32x16xf32>
    %122 = vector.shape_cast %119 : vector<32x16xf32> to vector<1x1x32x16xf32>
    tpu.vector_store %arg9[%c0_46, %c1_47, %c0_48, %c0_49], %122 {strides = array<i32>} : memref<1x4x32x16xf32, #tpu.memory_space<vmem>>, vector<1x1x32x16xf32>,
    %123 = arith.truncf %87 : vector<8x32xf32> to vector<8x32xbf16>
    %124 = arith.truncf %119 : vector<32x16xf32> to vector<32x16xbf16>
    %cst_50 = arith.constant dense<0.000000e+00> : vector<8x16xf32>
    %125 = tpu.matmul %123, %124, %cst_50 {dimension_numbers = #tpu.dot_dimension_numbers<[1], [0], [0], [1], [0, 0, 1, 1], [], []>} : vector<8x32xbf16>, vector<32x16xbf16>, vector<8x16xf32> -> vector<8x16xf32>
    %cst_51 = arith.constant 2.500000e-01 : f32
    %126 = vector.broadcast %cst_51 : f32 to vector<8x1xf32>
    %127 = arith.mulf %108, %126 : vector<8x1xf32>
    %128 = vector.broadcast %127 : vector<8x1xf32> to vector<8x16xf32>
    %129 = arith.mulf %125, %128 : vector<8x16xf32>
    %130 = vector.extract_strided_slice %5 {offsets = [0, 32], sizes = [8, 16], strides = [1, 1]} : vector<8x192xf32> to vector<8x16xf32>
    %131 = vector.extract_strided_slice %5 {offsets = [0, 96], sizes = [8, 16], strides = [1, 1]} : vector<8x192xf32> to vector<8x16xf32>
    %132 = vector.extract_strided_slice %5 {offsets = [0, 160], sizes = [8, 16], strides = [1, 1]} : vector<8x192xf32> to vector<8x16xf32>
    %133 = vector.extract_strided_slice %11 {offsets = [0, 2], sizes = [8, 1], strides = [1, 1]} : vector<8x4xf32> to vector<8x1xf32>
    %c0_52 = arith.constant 0 : index
    %c2 = arith.constant 2 : index
    %c0_53 = arith.constant 0 : index
    %c0_54 = arith.constant 0 : index
    %134 = vector.load %arg7[%c0_52, %c2, %c0_53, %c0_54] : memref<1x4x32x16xf32, #tpu.memory_space<vmem>>, vector<1x1x32x16xf32>
    %135 = vector.shape_cast %134 : vector<1x1x32x16xf32> to vector<32x16xf32>
    %cst_55 = arith.constant 0.000000e+00 : f32
    %136 = vector.broadcast %cst_55 : f32 to vector<8x16xf32>
    %137 = arith.maximumf %130, %136 : vector<8x16xf32>
    %cst_56 = arith.constant 0.000000e+00 : f32
    %138 = vector.broadcast %cst_56 : f32 to vector<8x16xf32>
    %139 = arith.subf %138, %130 : vector<8x16xf32>
    %cst_57 = arith.constant 0.000000e+00 : f32
    %140 = vector.broadcast %cst_57 : f32 to vector<8x16xf32>
    %141 = arith.maximumf %139, %140 : vector<8x16xf32>
    %142 = tpu.concatenate %137, %141 in 1 : vector<8x16xf32>, vector<8x16xf32> -> vector<8x32xf32>
    %143 = vector.extract_strided_slice %142 {offsets = [0, 31], sizes = [8, 1], strides = [1, 1]} : vector<8x32xf32> to vector<8x1xf32>
    %144 = vector.extract_strided_slice %142 {offsets = [0, 0], sizes = [8, 31], strides = [1, 1]} : vector<8x32xf32> to vector<8x31xf32>
    %145 = tpu.concatenate %143, %144 in 1 : vector<8x1xf32>, vector<8x31xf32> -> vector<8x32xf32>
    %146 = arith.mulf %142, %145 : vector<8x32xf32>
    %cst_58 = arith.constant 0.000000e+00 : f32
    %147 = vector.broadcast %cst_58 : f32 to vector<8x16xf32>
    %148 = arith.maximumf %131, %147 : vector<8x16xf32>
    %cst_59 = arith.constant 0.000000e+00 : f32
    %149 = vector.broadcast %cst_59 : f32 to vector<8x16xf32>
    %150 = arith.subf %149, %131 : vector<8x16xf32>
    %cst_60 = arith.constant 0.000000e+00 : f32
    %151 = vector.broadcast %cst_60 : f32 to vector<8x16xf32>
    %152 = arith.maximumf %150, %151 : vector<8x16xf32>
    %153 = tpu.concatenate %148, %152 in 1 : vector<8x16xf32>, vector<8x16xf32> -> vector<8x32xf32>
    %154 = vector.extract_strided_slice %153 {offsets = [0, 31], sizes = [8, 1], strides = [1, 1]} : vector<8x32xf32> to vector<8x1xf32>
    %155 = vector.extract_strided_slice %153 {offsets = [0, 0], sizes = [8, 31], strides = [1, 1]} : vector<8x32xf32> to vector<8x31xf32>
    %156 = tpu.concatenate %154, %155 in 1 : vector<8x1xf32>, vector<8x31xf32> -> vector<8x32xf32>
    %157 = arith.mulf %153, %156 : vector<8x32xf32>
    %cst_61 = arith.constant dense<0.000000e+00> : vector<8xf32>
    %158 = vector.multi_reduction <add>, %157, %cst_61 [1] : vector<8x32xf32> to vector<8xf32>
    %159 = vector.shape_cast %158 : vector<8xf32> to vector<8x1xf32>
    %cst_62 = arith.constant 9.99999996E-13 : f32
    %160 = vector.broadcast %cst_62 : f32 to vector<8x1xf32>
    %161 = arith.addf %159, %160 : vector<8x1xf32>
    %162 = tpu.reciprocal %161 {approx = true} : vector<8x1xf32> -> vector<8x1xf32>
    %cst_63 = arith.constant dense<0.000000e+00> : vector<8xf32>
    %163 = vector.multi_reduction <add>, %146, %cst_63 [1] : vector<8x32xf32> to vector<8xf32>
    %164 = vector.shape_cast %163 : vector<8xf32> to vector<8x1xf32>
    %cst_64 = arith.constant 9.99999996E-13 : f32
    %165 = vector.broadcast %cst_64 : f32 to vector<8x1xf32>
    %166 = arith.addf %164, %165 : vector<8x1xf32>
    %167 = tpu.reciprocal %166 {approx = true} : vector<8x1xf32> -> vector<8x1xf32>
    %168 = vector.broadcast %162 : vector<8x1xf32> to vector<8x32xf32>
    %169 = arith.mulf %157, %168 : vector<8x32xf32>
    %170 = arith.truncf %169 : vector<8x32xf32> to vector<8x32xbf16>
    %171 = arith.truncf %135 : vector<32x16xf32> to vector<32x16xbf16>
    %cst_65 = arith.constant dense<0.000000e+00> : vector<8x16xf32>
    %172 = tpu.matmul %170, %171, %cst_65 {dimension_numbers = #tpu.dot_dimension_numbers<[1], [0], [0], [1], [0, 0, 1, 1], [], []>} : vector<8x32xbf16>, vector<32x16xbf16>, vector<8x16xf32> -> vector<8x16xf32>
    %173 = arith.subf %132, %172 : vector<8x16xf32>
    %174 = vector.broadcast %133 : vector<8x1xf32> to vector<8x16xf32>
    %175 = arith.mulf %174, %173 : vector<8x16xf32>
    %176 = arith.truncf %175 : vector<8x16xf32> to vector<8x16xbf16>
    %cst_66 = arith.constant dense<0.000000e+00> : vector<32x16xf32>
    %177 = tpu.matmul %170, %176, %cst_66 {dimension_numbers = #tpu.dot_dimension_numbers<[0], [0], [1], [1], [0, 1, 1, 1], [], []>} : vector<8x32xbf16>, vector<8x16xbf16>, vector<32x16xf32> -> vector<32x16xf32>
    %178 = arith.addf %135, %177 : vector<32x16xf32>
    %c0_67 = arith.constant 0 : index
    %c2_68 = arith.constant 2 : index
    %c0_69 = arith.constant 0 : index
    %c0_70 = arith.constant 0 : index
    %179 = vector.load %arg9[%c0_67, %c2_68, %c0_69, %c0_70] : memref<1x4x32x16xf32, #tpu.memory_space<vmem>>, vector<1x1x32x16xf32>
    %180 = vector.shape_cast %179 : vector<1x1x32x16xf32> to vector<32x16xf32>
    %181 = vector.shape_cast %178 : vector<32x16xf32> to vector<1x1x32x16xf32>
    tpu.vector_store %arg9[%c0_67, %c2_68, %c0_69, %c0_70], %181 {strides = array<i32>} : memref<1x4x32x16xf32, #tpu.memory_space<vmem>>, vector<1x1x32x16xf32>,
    %182 = arith.truncf %146 : vector<8x32xf32> to vector<8x32xbf16>
    %183 = arith.truncf %178 : vector<32x16xf32> to vector<32x16xbf16>
    %cst_71 = arith.constant dense<0.000000e+00> : vector<8x16xf32>
    %184 = tpu.matmul %182, %183, %cst_71 {dimension_numbers = #tpu.dot_dimension_numbers<[1], [0], [0], [1], [0, 0, 1, 1], [], []>} : vector<8x32xbf16>, vector<32x16xbf16>, vector<8x16xf32> -> vector<8x16xf32>
    %cst_72 = arith.constant 2.500000e-01 : f32
    %185 = vector.broadcast %cst_72 : f32 to vector<8x1xf32>
    %186 = arith.mulf %167, %185 : vector<8x1xf32>
    %187 = vector.broadcast %186 : vector<8x1xf32> to vector<8x16xf32>
    %188 = arith.mulf %184, %187 : vector<8x16xf32>
    %189 = vector.extract_strided_slice %5 {offsets = [0, 48], sizes = [8, 16], strides = [1, 1]} : vector<8x192xf32> to vector<8x16xf32>
    %190 = vector.extract_strided_slice %5 {offsets = [0, 112], sizes = [8, 16], strides = [1, 1]} : vector<8x192xf32> to vector<8x16xf32>
    %191 = vector.extract_strided_slice %5 {offsets = [0, 176], sizes = [8, 16], strides = [1, 1]} : vector<8x192xf32> to vector<8x16xf32>
    %192 = vector.extract_strided_slice %11 {offsets = [0, 3], sizes = [8, 1], strides = [1, 1]} : vector<8x4xf32> to vector<8x1xf32>
    %c0_73 = arith.constant 0 : index
    %c3 = arith.constant 3 : index
    %c0_74 = arith.constant 0 : index
    %c0_75 = arith.constant 0 : index
    %193 = vector.load %arg7[%c0_73, %c3, %c0_74, %c0_75] : memref<1x4x32x16xf32, #tpu.memory_space<vmem>>, vector<1x1x32x16xf32>
    %194 = vector.shape_cast %193 : vector<1x1x32x16xf32> to vector<32x16xf32>
    %cst_76 = arith.constant 0.000000e+00 : f32
    %195 = vector.broadcast %cst_76 : f32 to vector<8x16xf32>
    %196 = arith.maximumf %189, %195 : vector<8x16xf32>
    %cst_77 = arith.constant 0.000000e+00 : f32
    %197 = vector.broadcast %cst_77 : f32 to vector<8x16xf32>
    %198 = arith.subf %197, %189 : vector<8x16xf32>
    %cst_78 = arith.constant 0.000000e+00 : f32
    %199 = vector.broadcast %cst_78 : f32 to vector<8x16xf32>
    %200 = arith.maximumf %198, %199 : vector<8x16xf32>
    %201 = tpu.concatenate %196, %200 in 1 : vector<8x16xf32>, vector<8x16xf32> -> vector<8x32xf32>
    %202 = vector.extract_strided_slice %201 {offsets = [0, 31], sizes = [8, 1], strides = [1, 1]} : vector<8x32xf32> to vector<8x1xf32>
    %203 = vector.extract_strided_slice %201 {offsets = [0, 0], sizes = [8, 31], strides = [1, 1]} : vector<8x32xf32> to vector<8x31xf32>
    %204 = tpu.concatenate %202, %203 in 1 : vector<8x1xf32>, vector<8x31xf32> -> vector<8x32xf32>
    %205 = arith.mulf %201, %204 : vector<8x32xf32>
    %cst_79 = arith.constant 0.000000e+00 : f32
    %206 = vector.broadcast %cst_79 : f32 to vector<8x16xf32>
    %207 = arith.maximumf %190, %206 : vector<8x16xf32>
    %cst_80 = arith.constant 0.000000e+00 : f32
    %208 = vector.broadcast %cst_80 : f32 to vector<8x16xf32>
    %209 = arith.subf %208, %190 : vector<8x16xf32>
    %cst_81 = arith.constant 0.000000e+00 : f32
    %210 = vector.broadcast %cst_81 : f32 to vector<8x16xf32>
    %211 = arith.maximumf %209, %210 : vector<8x16xf32>
    %212 = tpu.concatenate %207, %211 in 1 : vector<8x16xf32>, vector<8x16xf32> -> vector<8x32xf32>
    %213 = vector.extract_strided_slice %212 {offsets = [0, 31], sizes = [8, 1], strides = [1, 1]} : vector<8x32xf32> to vector<8x1xf32>
    %214 = vector.extract_strided_slice %212 {offsets = [0, 0], sizes = [8, 31], strides = [1, 1]} : vector<8x32xf32> to vector<8x31xf32>
    %215 = tpu.concatenate %213, %214 in 1 : vector<8x1xf32>, vector<8x31xf32> -> vector<8x32xf32>
    %216 = arith.mulf %212, %215 : vector<8x32xf32>
    %cst_82 = arith.constant dense<0.000000e+00> : vector<8xf32>
    %217 = vector.multi_reduction <add>, %216, %cst_82 [1] : vector<8x32xf32> to vector<8xf32>
    %218 = vector.shape_cast %217 : vector<8xf32> to vector<8x1xf32>
    %cst_83 = arith.constant 9.99999996E-13 : f32
    %219 = vector.broadcast %cst_83 : f32 to vector<8x1xf32>
    %220 = arith.addf %218, %219 : vector<8x1xf32>
    %221 = tpu.reciprocal %220 {approx = true} : vector<8x1xf32> -> vector<8x1xf32>
    %cst_84 = arith.constant dense<0.000000e+00> : vector<8xf32>
    %222 = vector.multi_reduction <add>, %205, %cst_84 [1] : vector<8x32xf32> to vector<8xf32>
    %223 = vector.shape_cast %222 : vector<8xf32> to vector<8x1xf32>
    %cst_85 = arith.constant 9.99999996E-13 : f32
    %224 = vector.broadcast %cst_85 : f32 to vector<8x1xf32>
    %225 = arith.addf %223, %224 : vector<8x1xf32>
    %226 = tpu.reciprocal %225 {approx = true} : vector<8x1xf32> -> vector<8x1xf32>
    %227 = vector.broadcast %221 : vector<8x1xf32> to vector<8x32xf32>
    %228 = arith.mulf %216, %227 : vector<8x32xf32>
    %229 = arith.truncf %228 : vector<8x32xf32> to vector<8x32xbf16>
    %230 = arith.truncf %194 : vector<32x16xf32> to vector<32x16xbf16>
    %cst_86 = arith.constant dense<0.000000e+00> : vector<8x16xf32>
    %231 = tpu.matmul %229, %230, %cst_86 {dimension_numbers = #tpu.dot_dimension_numbers<[1], [0], [0], [1], [0, 0, 1, 1], [], []>} : vector<8x32xbf16>, vector<32x16xbf16>, vector<8x16xf32> -> vector<8x16xf32>
    %232 = arith.subf %191, %231 : vector<8x16xf32>
    %233 = vector.broadcast %192 : vector<8x1xf32> to vector<8x16xf32>
    %234 = arith.mulf %233, %232 : vector<8x16xf32>
    %235 = arith.truncf %234 : vector<8x16xf32> to vector<8x16xbf16>
    %cst_87 = arith.constant dense<0.000000e+00> : vector<32x16xf32>
    %236 = tpu.matmul %229, %235, %cst_87 {dimension_numbers = #tpu.dot_dimension_numbers<[0], [0], [1], [1], [0, 1, 1, 1], [], []>} : vector<8x32xbf16>, vector<8x16xbf16>, vector<32x16xf32> -> vector<32x16xf32>
    %237 = arith.addf %194, %236 : vector<32x16xf32>
    %c0_88 = arith.constant 0 : index
    %c3_89 = arith.constant 3 : index
    %c0_90 = arith.constant 0 : index
    %c0_91 = arith.constant 0 : index
    %238 = vector.load %arg9[%c0_88, %c3_89, %c0_90, %c0_91] : memref<1x4x32x16xf32, #tpu.memory_space<vmem>>, vector<1x1x32x16xf32>
    %239 = vector.shape_cast %238 : vector<1x1x32x16xf32> to vector<32x16xf32>
    %240 = vector.shape_cast %237 : vector<32x16xf32> to vector<1x1x32x16xf32>
    tpu.vector_store %arg9[%c0_88, %c3_89, %c0_90, %c0_91], %240 {strides = array<i32>} : memref<1x4x32x16xf32, #tpu.memory_space<vmem>>, vector<1x1x32x16xf32>,
    %241 = arith.truncf %205 : vector<8x32xf32> to vector<8x32xbf16>
    %242 = arith.truncf %237 : vector<32x16xf32> to vector<32x16xbf16>
    %cst_92 = arith.constant dense<0.000000e+00> : vector<8x16xf32>
    %243 = tpu.matmul %241, %242, %cst_92 {dimension_numbers = #tpu.dot_dimension_numbers<[1], [0], [0], [1], [0, 0, 1, 1], [], []>} : vector<8x32xbf16>, vector<32x16xbf16>, vector<8x16xf32> -> vector<8x16xf32>
    %cst_93 = arith.constant 2.500000e-01 : f32
    %244 = vector.broadcast %cst_93 : f32 to vector<8x1xf32>
    %245 = arith.mulf %226, %244 : vector<8x1xf32>
    %246 = vector.broadcast %245 : vector<8x1xf32> to vector<8x16xf32>
    %247 = arith.mulf %243, %246 : vector<8x16xf32>
    %248 = tpu.concatenate %70, %129, %188, %247 in 1 : vector<8x16xf32>, vector<8x16xf32>, vector<8x16xf32>, vector<8x16xf32> -> vector<8x64xf32>
    %249 = arith.truncf %248 : vector<8x64xf32> to vector<8x64xbf16>
    %c0_94 = arith.constant 0 : index
    %c0_95 = arith.constant 0 : index
    %250 = vector.load %arg5[%c0_94, %c0_95] : memref<64x32xf32, #tpu.memory_space<vmem>>, vector<64x32xf32>
    %251 = arith.truncf %250 : vector<64x32xf32> to vector<64x32xbf16>
    %cst_96 = arith.constant dense<0.000000e+00> : vector<8x32xf32>
    %252 = tpu.matmul %249, %251, %cst_96 {dimension_numbers = #tpu.dot_dimension_numbers<[1], [0], [0], [1], [0, 0, 1, 1], [], []>} : vector<8x64xbf16>, vector<64x32xbf16>, vector<8x32xf32> -> vector<8x32xf32>
    %c0_97 = arith.constant 0 : index
    %c0_98 = arith.constant 0 : index
    %253 = vector.load %arg6[%c0_97, %c0_98] : memref<1x32xf32, #tpu.memory_space<vmem>>, vector<1x32xf32>
    %254 = vector.broadcast %253 : vector<1x32xf32> to vector<8x32xf32>
    %255 = arith.addf %252, %254 : vector<8x32xf32>
    %c0_99 = arith.constant 0 : index
    %c0_100 = arith.constant 0 : index
    %c0_101 = arith.constant 0 : index
    %256 = vector.load %arg8[%c0_99, %c0_100, %c0_101] : memref<1x8x32xf32, #tpu.memory_space<vmem>>, vector<1x8x32xf32>
    %257 = vector.shape_cast %256 : vector<1x8x32xf32> to vector<8x32xf32>
    %258 = vector.shape_cast %255 : vector<8x32xf32> to vector<1x8x32xf32>
    tpu.vector_store %arg8[%c0_99, %c0_100, %c0_101], %258 {strides = array<i32>} : memref<1x8x32xf32, #tpu.memory_space<vmem>>, vector<1x8x32xf32>,
    return
  }
  func.func @transform_0(%arg0: i32) -> (i32, i32, i32) {
    %c0_i32 = arith.constant 0 : i32
    %c0_i32_0 = arith.constant 0 : i32
    %c0_i32_1 = arith.constant 0 : i32
    return %arg0, %c0_i32, %c0_i32_0 : i32, i32, i32
  }
  func.func @transform_1(%arg0: i32) -> (i32, i32) {
    %c0_i32 = arith.constant 0 : i32
    %c0_i32_0 = arith.constant 0 : i32
    %c0_i32_1 = arith.constant 0 : i32
    return %c0_i32, %c0_i32_0 : i32, i32
  }
  func.func @transform_2(%arg0: i32) -> (i32, i32) {
    %c0_i32 = arith.constant 0 : i32
    %c0_i32_0 = arith.constant 0 : i32
    %c0_i32_1 = arith.constant 0 : i32
    return %c0_i32, %c0_i32_0 : i32, i32
  }
  func.func @transform_3(%arg0: i32) -> (i32, i32) {
    %c0_i32 = arith.constant 0 : i32
    %c0_i32_0 = arith.constant 0 : i32
    %c0_i32_1 = arith.constant 0 : i32
    return %c0_i32, %c0_i32_0 : i32, i32
  }
  func.func @transform_4(%arg0: i32) -> (i32, i32) {
    %c0_i32 = arith.constant 0 : i32
    %c0_i32_0 = arith.constant 0 : i32
    %c0_i32_1 = arith.constant 0 : i32
    return %c0_i32, %c0_i32_0 : i32, i32
  }
  func.func @transform_5(%arg0: i32) -> (i32, i32) {
    %c0_i32 = arith.constant 0 : i32
    %c0_i32_0 = arith.constant 0 : i32
    %c0_i32_1 = arith.constant 0 : i32
    return %c0_i32, %c0_i32_0 : i32, i32
  }
  func.func @transform_6(%arg0: i32) -> (i32, i32, i32, i32) {
    %c0_i32 = arith.constant 0 : i32
    %c0_i32_0 = arith.constant 0 : i32
    %c0_i32_1 = arith.constant 0 : i32
    %c0_i32_2 = arith.constant 0 : i32
    return %arg0, %c0_i32, %c0_i32_0, %c0_i32_1 : i32, i32, i32, i32
  }
  func.func @transform_7(%arg0: i32) -> (i32, i32, i32) {
    %c0_i32 = arith.constant 0 : i32
    %c0_i32_0 = arith.constant 0 : i32
    %c0_i32_1 = arith.constant 0 : i32
    return %arg0, %c0_i32, %c0_i32_0 : i32, i32, i32
  }
  func.func @transform_8(%arg0: i32) -> (i32, i32, i32, i32) {
    %c0_i32 = arith.constant 0 : i32
    %c0_i32_0 = arith.constant 0 : i32
    %c0_i32_1 = arith.constant 0 : i32
    %c0_i32_2 = arith.constant 0 : i32
    return %arg0, %c0_i32, %c0_i32_0, %c0_i32_1 : i32, i32, i32, i32
  }
}

</mosaic_0001>

<bundles_post_ra>
// kernel: tpu_custom_call.1
= control target key start
LH: loop header
LB: loop body
LE: loop exit
PB: predicated region body
PF: predicated region fallthrough
CT: control target
= control target key end

     0   :  { %6 = vsyncpa [#allocation3], 0  ;;  %s140_s0 = inlined_call_operand.hbm [shape: f32[8,32], index: 0, kind: input, shape index: {}]   ;;  %s141_s1 = inlined_call_operand.hbm [shape: f32[8,32], index: 1, kind: output, shape index: {}]  }
   0x1   :  { %7 = vsyncpa [#allocation4], 0  ;;  %s102_s6 = smov [#allocation2]   ;;  %s54_s10 = scalar_lea.hbm %s140_s0, 128 }
   0x2   :  { %s14_s7 = sshll.u32 %s102_s6, 4  ;;  %p55_p0 = scmp.ne.s32.totalorder %s140_s0, %s54_s10  ;;  %s15_s7 = int_to_ptr.vmem [resolvable:$true] %s14_s7 }
   0x3   :  { %p58_p1 = scmp.lt.u32.totalorder %s54_s10, %s140_s0 }
   0x5   :  { %p60_p2 = pnand %p58_p1, %p55_p0 }
   0x7   :  { %63 = shalt.err (!%p60_p2)
}
   0x8   :  { %s64_s15 = scalar_lea.vmem %s15_s7, 128  ;;  %p69_p4 = scmp.lt.s32.totalorder %s15_s7, %s15_s7 }
   0x9   :  { %p65_p3 = scmp.ne.s32.totalorder %s15_s7, %s64_s15  ;;  %p70_p5 = scmp.lt.s32.totalorder %s64_s15, %s64_s15 }
   0xb   :  { %p71_p6 = por %p70_p5, %p69_p4 }
   0xd   :  { %p72_p7 = pnand %p71_p6, %p65_p3 }
   0xf   :  { %75 = shalt.err (!%p72_p7)
}
  0x10   :  { %17 = dma.hbm_to_vmem [thread:$0]  %s140_s0, 128, %s15_s7, [#allocation3]  }
  0x11   :  { %98 = dma.done.wait [#allocation3], 128  }
  0x12   :  { %99 = vsyncadd [#allocation3], 4294967168  ;;  %v21_v0 = vld [vmem:[#allocation2] sm:$0xff]  ;;  %s103_s18 = smov 32   ;;  %vm22_vm0 = vcmask 1047808   ;;  %s104_s19 = smov 97  }
  0x13   :  { %23 = vrot.lane.b32.xlu0 %v21_v0, %s103_s18  ;;  %s105_s20 = smov [#allocation5]   ;;  %vm33_vm1 = vcmask 261120  }
  0x14   :  { %s41_s21 = sshll.u32 %s105_s20, 4  ;;  %s42_s21 = int_to_ptr.vmem [resolvable:$true] %s41_s21 }
  0x15   :  { %s76_s0 = scalar_lea.vmem %s42_s21, 128  ;;  %p81_p9 = scmp.lt.s32.totalorder %s42_s21, %s42_s21 }
  0x16   :  { %p77_p8 = scmp.ne.s32.totalorder %s42_s21, %s76_s0  ;;  %p82_p10 = scmp.lt.s32.totalorder %s76_s0, %s76_s0 }
  0x18   :  { %p83_p11 = por %p82_p10, %p81_p9 }
  0x1a   :  { %p84_p12 = pnand %p83_p11, %p77_p8 }
  0x85   :  { %v24_v1 = vpop.permute.xlu0 %23 }
  0x86   :  { %v25_v2 = vsel %vm22_vm0, %v24_v1, %v21_v0 }
  0x87   :  { %26 = vrot.lane.b32.xlu0 %v25_v2, %s103_s18 }
  0xf9   :  { %v27_v3 = vpop.permute.xlu0 %26 }
  0xfa   :  { %v28_v4 = vsel %vm22_vm0, %v27_v3, %v21_v0 }
  0xfb   :  { %30 = vrot.lane.b32.xlu1 %v28_v4, %s104_s19 }
 0x16d   :  { %v31_v5 = vpop.permute.xlu1 %30 }
 0x16e   :  { %34 = vst.msk [vmem:[#allocation5] sm:$0xff] %vm33_vm1, %v31_v5 }
 0x16f   :  { %87 = shalt.err (!%p84_p12)
}
 0x170   :  { %s88_s24 = scalar_lea.hbm %s141_s1, 128 }
 0x171   :  { %p89_p13 = scmp.ne.s32.totalorder %s141_s1, %s88_s24  ;;  %p92_p0 = scmp.lt.u32.totalorder %s88_s24, %s141_s1 }
 0x173   :  { %p94_p1 = pnand %p92_p0, %p89_p13 }
 0x175   :  { %97 = shalt.err (!%p94_p1)
}
 0x176   :  { %44 = dma.vmem_to_hbm [thread:$0]  %s42_s21, 128, %s141_s1, [#allocation4]  }
 0x177   :  { %100 = dma.done.wait [#allocation4], 128  }
 0x178   :  { %101 = vsyncadd [#allocation4], 4294967168 }
 0x179   :  { %48 = vsyncpa [#allocation3], 1 }
 0x17a   :  { %49 = vsyncpa [#allocation4], 1 }

// kernel: tpu_custom_call.1
= control target key start
LH: loop header
LB: loop body
LE: loop exit
PB: predicated region body
PF: predicated region fallthrough
CT: control target
= control target key end

     0   :  { %14 = vsyncpa [#allocation3], 0  ;;  %s2505_s0 = inlined_call_operand.vmem [shape: f32[2,8,32], index: 0, kind: input, shape index: {}]   ;;  %s2506_s1 = inlined_call_operand.vmem [shape: f32[32,192], index: 1, kind: input, shape index: {}]   ;;  %s2507_s2 = inlined_call_operand.vmem [shape: f32[32,4], index: 2, kind: input, shape index: {}]   ;;  %s2508_s3 = inlined_call_operand.vmem [shape: f32[1,4], index: 3, kind: input, shape index: {}]   ;;  %s2509_s4 = inlined_call_operand.vmem [shape: f32[64,32], index: 4, kind: input, shape index: {}]   ;;  %s2510_s5 = inlined_call_operand.vmem [shape: f32[1,32], index: 5, kind: input, shape index: {}]   ;;  %s2511_s6 = inlined_call_operand.vmem [shape: f32[2,4,32,16], index: 6, kind: input, shape index: {}, may-alias: {6,8}]   ;;  %s2512_s7 = inlined_call_operand.hbm [shape: f32[2,8,32], index: 7, kind: output, shape index: {0}]   ;;  %s2513_s8 = inlined_call_operand.vmem [shape: f32[2,4,32,16], index: 8, kind: output, shape index: {1}, may-alias: {6,8}]  }
   0x1   :  { %16 = vsyncpa [#allocation3 + $0x1], 0  ;;  %s2013_s27 = smov 0   ;;  %s2015_s28 = smov 0  }
   0x2   :  { %s2017_s29 = smov 0   ;;  %s2019_s30 = smov 0  }
   0x3 LB: > { %s2034_s9 = sadd.s32 4294967295, %s1950_s30   ;;  %s1597_s10 = sadd.s32 4294967294, %s1950_s30   ;;  %s1950_s30 = sphi %s2019_s30, %s2519_s30   ;;  %s1946_s29 = sphi %s2017_s29, %s2518_s29   ;;  %s1942_s28 = sphi %s2015_s28, %s2517_s28   ;;  %s1938_s27 = sphi %s2013_s27, %s2516_s27  }
   0x4   : > { %s2038_s11 = sadd.s32 1, %s1950_s30   ;;  %s186_s12 = sadd.s32 1, %s1946_s29 }
   0x5   : > { %s183_s13 = ssub.s32 %s1950_s30, %s2038_s11  ;;  %p196_p0 = scmp.ne.s32.totalorder %s1946_s29, %s1942_s28 }
   0x6   : > { %p184_p1 = scmp.eq.s32.totalorder %s183_s13, 0  ;;  %p197_p2 = scmp.eq.s32.totalorder %s2034_s9, 1 }
   0x7   : > { %p202_p3 = scmp.ne.s32.totalorder %s1942_s28, %s1938_s27  ;;  %p203_p4 = scmp.eq.s32.totalorder %s1597_s10, 1 }
   0x8   : > { %s2049_s14 = scalar_select %p184_p1, %s1946_s29, %s186_s12  }
   0x9   : > { %p2051_p5 = por %p197_p2, %p196_p0  ;;  %p2055_p6 = por %p203_p4, %p202_p3 }
   0xa   : > { %p1600_p7 = scmp.ge.s32.totalorder %s1950_s30, 1  ;;  %p277_p8 = scmp.lt.s32.totalorder %s1950_s30, 3 }
   0xc   : > { %p278_p9 = pnand %p1600_p7, %p277_p8 }
   0xd   : > { %v338_v0 = vld [vmem:[%s2506_s1 + $0x8] sm:$0xff] (!%p278_p9)  ;;  %v340_v1 = vld [vmem:[%s2506_s1 + $0x18] sm:$0xff] (!%p278_p9)  ;;  %v337_v2 = vld [vmem:[%s2506_s1] sm:$0xff] (!%p278_p9)  ;;  %p320_p10 = scmp.lt.s32.totalorder (!%p278_p9), %s2034_s9, 1  ;;  %v1952_v7 = vmov (!%p278_p9), 0   ;;  %vm349_vm0 = vcmask (!%p278_p9), 261120  }
   0xe   : > { %281 = sbr.rel (%p278_p9) target bundleno = 3769 (0xeb9), region = 48  ;;  %v346_v3 = vpack.c.bf16 (!%p278_p9), %v340_v1, %v338_v0  ;;  %v339_v4 = vld [vmem:[%s2506_s1 + $0x10] sm:$0xff] (!%p278_p9)  ;;  %v342_v5 = vld [vmem:[%s2506_s1 + $0x28] sm:$0xff] (!%p278_p9)  ;;  %v344_v6 = vld [vmem:[%s2506_s1 + $0x38] sm:$0xff] (!%p278_p9)  ;;  %385 = vmatprep.mubr.bf16.mxu1 (!%p278_p9), %v1952_v7  ;;  %1868 = vset.pattern.permute.xlu1 (!%p278_p9), %v1952_v7  ;;  %v1953_v19 = vmov (!%p278_p9), 0.0   ;;  %vm1954_vm1 = vmmov (!%p278_p9), 0  }
   0xf   : > { %v345_v8 = vpack.c.bf16 (!%p278_p9), %v339_v4, %v337_v2  ;;  %v348_v9 = vpack.c.bf16 (!%p278_p9), %v344_v6, %v342_v5  ;;  %v341_v10 = vld [vmem:[%s2506_s1 + $0x20] sm:$0xff] (!%p278_p9)  ;;  %v343_v11 = vld [vmem:[%s2506_s1 + $0x30] sm:$0xff] (!%p278_p9)  ;;  %v395_v16 = vld [vmem:[%s2507_s2 + $0x8] sm:$0xff] (!%p278_p9)  ;;  %1710 = vmatprep.subr.bf16.mxu0 (!%p278_p9), %v1953_v19  ;;  %1714 = vmatprep.mubr.msk.bf16.mxu0 (!%p278_p9), %vm1954_vm1, %v1953_v19  ;;  %s1956_s22 = smov (!%p278_p9), 80   ;;  %vm458_vm2 = vcmask (!%p278_p9), 130048   ;;  %s1957_s23 = smov (!%p278_p9), 97  }
  0x10   : > { %353 = vmatprep.subr.bf16.mxu1 (!%p278_p9), %v346_v3  ;;  %v347_v12 = vpack.c.bf16 (!%p278_p9), %v343_v11, %v341_v10  ;;  %v394_v15 = vld [vmem:[%s2507_s2] sm:$0xff] (!%p278_p9)  ;;  %v396_v17 = vld [vmem:[%s2507_s2 + $0x10] sm:$0xff] (!%p278_p9)  ;;  %v397_v21 = vld [vmem:[%s2507_s2 + $0x18] sm:$0xff] (!%p278_p9)  ;;  %vm467_vm3 = vcmask (!%p278_p9), 7168   ;;  %s1959_s18 = smov (!%p278_p9), 48   ;;  %v1960_v54 = vmov (!%p278_p9), 1  }
  0x11   : > { %354 = vmatpush1.bf16.msra.mxu1 (!%p278_p9), %v345_v8  ;;  %v398_v20 = vpack.c.bf16 (!%p278_p9), %v395_v16, %v394_v15  ;;  %v399_v26 = vpack.c.bf16 (!%p278_p9), %v397_v21, %v396_v17  ;;  %v1608_v32 = vld [vmem:[%s2508_s3] ss:$0 sm:$0xff] (!%p278_p9)  ;;  %vm568_vm4 = vcmask (!%p278_p9), 64512   ;;  %s1961_s19 = smov (!%p278_p9), 16   ;;  %vm575_vm5 = vcmask (!%p278_p9), 1043456   ;;  %s1964_s25 = smov (!%p278_p9), 112  }
  0x12   : > { %355 = vmatprep.subr.bf16.mxu1 (!%p278_p9), %v348_v9  ;;  %v1963_v10 = vmov (!%p278_p9), 2   ;;  %vm1412_vm6 = vcmask (!%p278_p9), 392192   ;;  %vm1434_vm7 = vcmask (!%p278_p9), 523264  }
  0x13   : > { %1870 = vset.pattern.permute.xlu0 (!%p278_p9), %v1963_v10 }
  0x15   : > { %s2087_s20 = scalar_select %p320_p10, %s2034_s9, 1  ;;  %356 = vmatpush1.bf16.msra.mxu1 %v347_v12 }
  0x16   : > { %1702 = vmatprep.subr.bf16.mxu1 %v1953_v19 }
  0x17   : > { %s1602_s21 = sshll.u32 %s2087_s20, 3  ;;  %s1656_s10 = sshll.u32 %s2087_s20, 7 }
  0x18   : > { %s323_s24 = scalar_lea.vmem %s2505_s0, %s1602_s21  ;;  %s1955_s21 = smov 64  }
  0x19   : > { %v335_v13 = vld [vmem:[%s323_s24] sm:$0xff]  ;;  %s1958_s24 = smov 1   ;;  %s2141_s17 = scalar_lea.vmem %s2511_s6, %s1656_s10 }
  0x1a   : > { %v336_v14 = vpack.c.bf16 %v335_v13, %v335_v13  ;;  %v2144_v43 = vld [vmem:[%s2141_s17] sm:$0xff]  ;;  %v2147_v44 = vld [vmem:[%s2141_s17 + $0x8] sm:$0xff]  ;;  %v2150_v45 = vld [vmem:[%s2141_s17 + $0x10] sm:$0xff]  ;;  %s2203_s13 = scalar_lea.vmem %s2513_s8, %s1656_s10  ;;  %s1965_s20 = smov 96  }
  0x1b   : > { %v2153_v46 = vld [vmem:[%s2141_s17 + $0x18] sm:$0xff]  ;;  %v499_v47 = vpack.c.bf16 %v2147_v44, %v2144_v43 }
  0x1c   : > { %1607 = vmatmul.mubr.msk.bf16.vlgmr.msra.gmra.mrb[0].mxu1 %vm349_vm0, %v336_v14  ;;  %v500_v48 = vpack.c.bf16 %v2153_v46, %v2150_v45 }
  0x1d   : > { %1706 = vmatprep.mubr.msk.bf16.mxu1 %vm1954_vm1, %v1953_v19  ;;  %1703 = vmatpush3.bf16.msra.mxu1 %v398_v20 }
  0x1e   : > { %1704 = vmatprep.subr.bf16.mxu1 %v1953_v19  ;;  %1711 = vmatpush3.bf16.msra.mxu0 %v499_v47 }
  0x1f   : > { %1712 = vmatprep.subr.bf16.mxu0 %v1953_v19 }
  0x21   : > { %1705 = vmatpush3.bf16.msra.mxu1 %v399_v26 }
  0x22   : > { %1713 = vmatpush3.bf16.msra.mxu0 %v500_v48 }
  0x23   : > { %1724 = vmatprep.subr.bf16.mxu0 %v1953_v19 }
  0x24   : > { %1707 = vmatmul.mubr.msk.bf16.vlgmr.msra.gmra.mrb[4].mxu1 %vm349_vm0, %v336_v14 }
  0xef   : > { %v387_v18 = vpop.f32.mrb[0].mxu1 }
  0xf0   : > { %v2109_v22 = vmax.f32 %v387_v18, 0.0  ;;  %v452_v23 = vsub.f32 0.0, %v387_v18  ;;  %v2111_v24 = vpop.f32.mrb[1].mxu1 }
  0xf1   : > { %v391_v25 = vpop.f32.mrb[2].mxu1 }
  0xf2   : > { %471 = vrot.lane.b32.xlu0 %v2109_v22, %s1955_s21  ;;  %v392_v27 = vpop.f32.mrb[3].mxu1  ;;  %v2119_v28 = vmax.f32 %v452_v23, 0.0 }
  0xf6   : > { %474 = vrot.lane.b32.xlu0 %v2119_v28, %s1956_s22 }
  0xf7   : > { %v441_v33 = vpop.f32.mrb[4].mxu1 }
  0xf8   : > { %v2130_v34 = vadd.f32 %v1608_v32, %v441_v33  ;;  %v1708_v35 = vpop.f32.mrb[5].mxu1 }
  0xf9   : > { %v444_v36 = vpop.f32.mrb[6].mxu1 }
  0xfa   : > { %v1709_v37 = vpop.f32.mrb[7].mxu1 }
 0x164   : > { %v472_v29 = vpop.permute.xlu0 %471 }
 0x168   : > { %v475_v30 = vpop.permute.xlu0 %474 }
 0x169   : > { %v477_v31 = vsel %vm458_vm2, %v472_v29, %v475_v30 }
 0x16a   : > { %479 = vrot.lane.b32.xlu1 %v477_v31, %s1957_s23 }
 0x16e   : > { %482 = vrot.lane.b32.xlu1 %v477_v31, %s1958_s24 }
 0x172   : > { %547 = vperm.xlu1 %1868, %v2130_v34  }
 0x1dc   : > { %v480_v38 = vpop.permute.xlu1 %479 }
 0x1e0   : > { %v483_v39 = vpop.permute.xlu1 %482 }
 0x1e1   : > { %v485_v40 = vsel %vm467_vm3, %v480_v38, %v483_v39 }
 0x1e2   : > { %v486_v41 = vmul.f32 %v485_v40, %v477_v31 }
 0x1e4   : > { %v487_v42 = vsel %vm349_vm0, %v486_v41, 0.0 }
 0x1e5   : > { %488 = vadd.xlane.f32.xlu0 %v487_v42 }
 0x1f1   : > { %v548_v55 = vpop.permute.xlu1 %547 }
 0x1fb   : > { %702 = vrot.lane.b32.xlu0 %v2109_v22, %s1959_s18 }
 0x272   : > { %v489_v49 = vpop.xlane.xlu0 %488 }
 0x273   : > { %v490_v50 = vadd.f32 1e-12, %v489_v49 }
 0x275   : > { %1872 = vrcp.f32 %v490_v50 }
 0x276   : > { %v703_v58 = vpop.permute.xlu0 %702 }
 0x27f   : > { %v1873_v51 = vpop.eup %1872 }
 0x280   : > { %v497_v52 = vmul.f32 %v1873_v51, %v486_v41 }
 0x282   : > { %v498_v53 = vpack.c.bf16 %v497_v52, %v497_v52 }
 0x284   : > { %1715 = vmatmul.mubr.msk.bf16.vlgmr.msra.gmra.mrb[0].mxu0 %vm349_vm0, %v498_v53  ;;  %552 = vxpose.xlu1.c.b16.start.end [1/1] (short) (narrow) %v498_v53, 32 }
 0x285   : > { %1728 = vmatprep.mubr.msk.bf16.mxu0 %vm1954_vm1, %v1953_v19 }
 0x288   : > { %1869 = vset.pattern.permute.xlu1 %v1960_v54 }
 0x28c   : > { %705 = vrot.lane.b32.xlu1 %v2119_v28, %s1955_s21  ;;  %s1962_s21 = smov 32  }
 0x2ea   : > { %v560_v56 = vpop.trf.xlu1 }
 0x2eb   : > { %1720 = vmatprep.mubr.msk.bf16.mxu1 %vm568_vm4, %v560_v56 }
 0x2ee   : > { %v561_v57 = vpop.trf.xlu1 }
 0x2fe   : > { %v706_v59 = vpop.permute.xlu1 %705 }
 0x2ff   : > { %v708_v60 = vsel %vm458_vm2, %v703_v58, %v706_v59 }
 0x300   : > { %710 = vrot.lane.b32.xlu1 %v708_v60, %s1957_s23 }
 0x304   : > { %713 = vrot.lane.b32.xlu1 %v708_v60, %s1958_s24 }
 0x308   : > { %781 = vperm.xlu1 %1869, %v2130_v34  }
 0x30c   : > { %455 = vrot.lane.b32.xlu1 %v2119_v28, %s1961_s19 }
 0x357   : > { %v538_v61 = vpop.f32.mrb[0].mxu0 }
 0x358   : > { %v544_v62 = vsub.f32 %v2111_v24, %v538_v61  ;;  %v1716_v63 = vpop.f32.mrb[1].mxu0 }
 0x359   : > { %v541_v0 = vpop.f32.mrb[2].mxu0 }
 0x35a   : > { %v550_v1 = vmul.f32 %v548_v55, %v544_v62  ;;  %v1717_v2 = vpop.f32.mrb[3].mxu0 }
 0x35c   : > { %v551_v3 = vpack.c.bf16 %v550_v1, %v550_v1 }
 0x35e   : > { %1810 = vmatprep.subr.msk.bf16.mxu1 %vm575_vm5, %v551_v3  ;;  %v577_v4 = vsel %vm575_vm5, %v551_v3, 0 }
 0x35f   : > { %1719 = vmatpush3.bf16.msra.mxu1 %v577_v4 }
 0x360   : > { %1732 = vmatprep.subr.bf16.mxu1 %v1953_v19 }
 0x362   : > { %1721 = vmatmul.mubr.msk.bf16.vlgmr.msra.gmra.mrb[8].mxu1 %vm568_vm4, %v561_v57 }
 0x363   : > { %1736 = vmatprep.mubr.msk.bf16.mxu1 %vm1954_vm1, %v1953_v19 }
 0x372   : > { %v711_v5 = vpop.permute.xlu1 %710 }
 0x376   : > { %v714_v6 = vpop.permute.xlu1 %713 }
 0x377   : > { %v716_v7 = vsel %vm467_vm3, %v711_v5, %v714_v6 }
 0x378   : > { %v717_v8 = vmul.f32 %v716_v7, %v708_v60 }
 0x37a   : > { %v718_v9 = vsel %vm349_vm0, %v717_v8, 0.0 }
 0x37b   : > { %719 = vadd.xlane.f32.xlu0 %v718_v9 }
 0x387   : > { %v782_v40 = vpop.permute.xlu1 %781 }
 0x38b   : > { %v456_v42 = vpop.permute.xlu1 %455 }
 0x391   : > { %941 = vrot.lane.b32.xlu0 %v2109_v22, %s1962_s21 }
 0x395   : > { %944 = vrot.lane.b32.xlu0 %v2119_v28, %s1959_s18 }
 0x408   : > { %v720_v11 = vpop.xlane.xlu0 %719 }
 0x409   : > { %v721_v15 = vadd.f32 1e-12, %v720_v11 }
 0x40b   : > { %1874 = vrcp.f32 %v721_v15 }
 0x40c   : > { %v942_v12 = vpop.permute.xlu0 %941 }
 0x410   : > { %v945_v13 = vpop.permute.xlu0 %944 }
 0x411   : > { %v2189_v14 = vsel %vm458_vm2, %v942_v12, %v945_v13 }
 0x412   : > { %949 = vrot.lane.b32.xlu0 %v2189_v14, %s1957_s23 }
 0x415   : > { %v1875_v32 = vpop.eup %1874 }
 0x416   : > { %952 = vrot.lane.b32.xlu0 %v2189_v14, %s1958_s24  ;;  %v728_v37 = vmul.f32 %v1875_v32, %v717_v8 }
 0x418   : > { %v729_v39 = vpack.c.bf16 %v728_v37, %v728_v37 }
 0x41a   : > { %1020 = vperm.xlu0 %1870, %v2130_v34  }
 0x41e   : > { %689 = vrot.lane.b32.xlu0 %v2109_v22, %s1964_s25 }
 0x435   : > { %v1722_v16 = vpop.f32.mrb[8].mxu1 }
 0x436   : > { %v630_v17 = vadd.f32 %v1722_v16, %v2150_v45  ;;  %v613_v18 = vpop.f32.mrb[9].mxu1 }
 0x437   : > { %v628_v20 = vadd.f32 %v613_v18, %v2144_v43  ;;  %v1723_v21 = vpop.f32.mrb[10].mxu1 }
 0x438   : > { %634 = vst.msk [vmem:[%s2203_s13 + $0x10] sm:$0xff] %vm458_vm2, %v630_v17  ;;  %v631_v23 = vadd.f32 %v1723_v21, %v2153_v46  ;;  %v616_v25 = vpop.f32.mrb[11].mxu1  ;;  %v459_v46 = vsel %vm458_vm2, %v2109_v22, %v456_v42 }
 0x439   : > { %632 = vst.msk [vmem:[%s2203_s13] sm:$0xff] %vm458_vm2, %v628_v20  ;;  %v629_v26 = vadd.f32 %v616_v25, %v2147_v44 }
 0x43a   : > { %635 = vst.msk [vmem:[%s2203_s13 + $0x18] sm:$0xff] %vm458_vm2, %v631_v23  ;;  %v638_v27 = vpack.c.bf16 %v631_v23, %v630_v17 }
 0x43b   : > { %633 = vst.msk [vmem:[%s2203_s13 + $0x8] sm:$0xff] %vm458_vm2, %v629_v26  ;;  %v637_v29 = vpack.c.bf16 %v629_v26, %v628_v20 }
 0x43d   : > { %1725 = vmatpush3.bf16.msra.mxu0 %v637_v29 }
 0x43e   : > { %1726 = vmatprep.subr.bf16.mxu0 %v1953_v19 }
 0x441   : > { %1727 = vmatpush3.bf16.msra.mxu0 %v638_v27 }
 0x442   : > { %v2219_v30 = vld [vmem:[%s2141_s17 + $0x20] sm:$0xff]  ;;  %v2222_v31 = vld [vmem:[%s2141_s17 + $0x28] sm:$0xff]  ;;  %v2227_v35 = vld [vmem:[%s2141_s17 + $0x30] sm:$0xff] }
 0x443   : > { %v730_v33 = vpack.c.bf16 %v2222_v31, %v2219_v30  ;;  %v2230_v36 = vld [vmem:[%s2141_s17 + $0x38] sm:$0xff] }
 0x444   : > { %v731_v38 = vpack.c.bf16 %v2230_v36, %v2227_v35 }
 0x445   : > { %1733 = vmatpush3.bf16.msra.mxu1 %v730_v33 }
 0x446   : > { %1734 = vmatprep.subr.bf16.mxu1 %v1953_v19 }
 0x449   : > { %1735 = vmatpush3.bf16.msra.mxu1 %v731_v38 }
 0x44a   : > { %1746 = vmatprep.subr.bf16.mxu1 %v1953_v19 }
 0x44c   : > { %1737 = vmatmul.mubr.msk.bf16.vlgmr.msra.gmra.mrb[12].mxu1 %vm349_vm0, %v729_v39 }
 0x44d   : > { %1750 = vmatprep.mubr.msk.bf16.mxu1 %vm1954_vm1, %v1953_v19 }
 0x484   : > { %v950_v56 = vpop.permute.xlu0 %949 }
 0x488   : > { %v953_v57 = vpop.permute.xlu0 %952 }
 0x489   : > { %v955_v58 = vsel %vm467_vm3, %v950_v56, %v953_v57  ;;  %v1966_v56 = vmov 3  }
 0x48a   : > { %v956_v59 = vmul.f32 %v955_v58, %v2189_v14 }
 0x48c   : > { %v957_v60 = vsel %vm349_vm0, %v956_v59, 0.0 }
 0x499   : > { %v2255_v61 = vpop.permute.xlu0 %1020 }
 0x49d   : > { %v690_v62 = vpop.permute.xlu0 %689 }
 0x49e   : > { %v2259_v63 = vsel %vm458_vm2, %v690_v62, %v2119_v28 }
 0x51f   : > { %v769_v41 = vpop.f32.mrb[12].mxu1 }
 0x520   : > { %776 = vrot.lane.b32.xlu1 %v769_v41, %s1961_s19  ;;  %v1738_v43 = vpop.f32.mrb[13].mxu1 }
 0x521   : > { %v772_v44 = vpop.f32.mrb[14].mxu1 }
 0x522   : > { %v1739_v45 = vpop.f32.mrb[15].mxu1 }
 0x524   : > { %461 = vrot.lane.b32.xlu1 %v459_v46, %s1957_s23 }
 0x528   : > { %464 = vrot.lane.b32.xlu1 %v459_v46, %s1958_s24 }
 0x592   : > { %v777_v47 = vpop.permute.xlu1 %776 }
 0x593   : > { %v779_v48 = vsub.f32 %v2111_v24, %v777_v47 }
 0x595   : > { %v784_v49 = vmul.f32 %v782_v40, %v779_v48 }
 0x596   : > { %v462_v50 = vpop.permute.xlu1 %461 }
 0x597   : > { %v785_v51 = vpack.c.bf16 %v784_v49, %v784_v49 }
 0x599   : > { %803 = vrot.lane.b32.xlu1 %v785_v51, %s1964_s25 }
 0x59a   : > { %v465_v52 = vpop.permute.xlu1 %464 }
 0x59b   : > { %v468_v53 = vsel %vm467_vm3, %v462_v50, %v465_v52 }
 0x59c   : > { %v2247_v54 = vmul.f32 %v468_v53, %v459_v46 }
 0x59e   : > { %v636_v55 = vpack.c.bf16 %v2247_v54, %v2247_v54 }
 0x5a0   : > { %1729 = vmatmul.mubr.msk.bf16.vlgmr.msra.gmra.mrb[4].mxu0 %vm349_vm0, %v636_v55 }
 0x5bc   : > { %786 = vxpose.xlu1.c.b16.start.end [1/1] (short) (narrow) %v729_v39, 32 }
 0x5cd   : > { %958 = vadd.xlane.f32.xlu1 %v957_v60 }
 0x5de   : > { %694 = vrot.lane.b32.xlu1 %v2259_v63, %s1957_s23 }
 0x5e2   : > { %1180 = vrot.lane.b32.xlu1 %v2109_v22, %s1961_s19 }
 0x5e6   : > { %1183 = vrot.lane.b32.xlu1 %v2119_v28, %s1962_s21 }
 0x60b   : > { %v804_v0 = vpop.permute.xlu1 %803 }
 0x60c   : > { %v812_v1 = vsel %vm575_vm5, %v804_v0, 0  ;;  %1811 = vmatprep.subr.msk.bf16.mxu0 %vm575_vm5, %v804_v0 }
 0x60d   : > { %1741 = vmatpush3.bf16.msra.mxu0 %v812_v1 }
 0x60e   : > { %1754 = vmatprep.subr.bf16.mxu0 %v1953_v19 }
 0x622   : > { %v794_v2 = vpop.trf.xlu1 }
 0x623   : > { %1742 = vmatprep.mubr.msk.bf16.mxu0 %vm568_vm4, %v794_v2 }
 0x626   : > { %v795_v3 = vpop.trf.xlu1 }
 0x627   : > { %1743 = vmatmul.mubr.msk.bf16.vlgmr.msra.gmra.mrb[8].mxu0 %vm568_vm4, %v795_v3 }
 0x628   : > { %1758 = vmatprep.mubr.msk.bf16.mxu0 %vm1954_vm1, %v1953_v19 }
 0x65a   : > { %v959_v4 = vpop.xlane.xlu1 %958 }
 0x65b   : > { %v960_v18 = vadd.f32 1e-12, %v959_v4 }
 0x65d   : > { %1876 = vrcp.f32 %v960_v18 }
 0x65e   : > { %v695_v5 = vpop.permute.xlu1 %694 }
 0x662   : > { %v1181_v6 = vpop.permute.xlu1 %1180 }
 0x666   : > { %v1184_v7 = vpop.permute.xlu1 %1183 }
 0x667   : > { %v1186_v8 = vsel %vm458_vm2, %v1181_v6, %v1184_v7  ;;  %v1877_v37 = vpop.eup %1876 }
 0x668   : > { %1188 = vrot.lane.b32.xlu1 %v1186_v8, %s1957_s23  ;;  %v967_v40 = vmul.f32 %v1877_v37, %v956_v59 }
 0x66a   : > { %v968_v42 = vpack.c.bf16 %v967_v40, %v967_v40 }
 0x66c   : > { %1191 = vrot.lane.b32.xlu1 %v1186_v8, %s1958_s24 }
 0x673   : > { %v2277_v9 = vpop.f32.mrb[4].mxu0 }
 0x674   : > { %v1730_v10 = vpop.f32.mrb[5].mxu0 }
 0x675   : > { %v679_v11 = vpop.f32.mrb[6].mxu0 }
 0x676   : > { %v1731_v12 = vpop.f32.mrb[7].mxu0 }
 0x6da   : > { %v1189_v13 = vpop.permute.xlu1 %1188 }
 0x6de   : > { %v1192_v14 = vpop.permute.xlu1 %1191 }
 0x6df   : > { %v1194_v15 = vsel %vm467_vm3, %v1189_v13, %v1192_v14 }
 0x6e0   : > { %v2280_v16 = vmul.f32 %v1194_v15, %v1186_v8 }
 0x6e2   : > { %v1196_v17 = vsel %vm349_vm0, %v2280_v16, 0.0 }
 0x6e3   : > { %1197 = vadd.xlane.f32.xlu1 %v1196_v17 }
 0x6fa   : > { %v1744_v20 = vpop.f32.mrb[8].mxu0 }
 0x6fb   : > { %v865_v21 = vadd.f32 %v1744_v20, %v2227_v35  ;;  %v848_v23 = vpop.f32.mrb[9].mxu0 }
 0x6fc   : > { %v863_v25 = vadd.f32 %v2219_v30, %v848_v23  ;;  %v1745_v26 = vpop.f32.mrb[10].mxu0 }
 0x6fd   : > { %1623 = vst.msk [vmem:[%s2203_s13 + $0x30] sm:$0xff] %vm458_vm2, %v865_v21  ;;  %v866_v27 = vadd.f32 %v1745_v26, %v2230_v36  ;;  %v851_v29 = vpop.f32.mrb[11].mxu0 }
 0x6fe   : > { %1621 = vst.msk [vmem:[%s2203_s13 + $0x20] sm:$0xff] %vm458_vm2, %v863_v25  ;;  %v864_v32 = vadd.f32 %v2222_v31, %v851_v29 }
 0x6ff   : > { %1624 = vst.msk [vmem:[%s2203_s13 + $0x38] sm:$0xff] %vm458_vm2, %v866_v27  ;;  %v874_v33 = vpack.c.bf16 %v866_v27, %v865_v21 }
 0x700   : > { %1622 = vst.msk [vmem:[%s2203_s13 + $0x28] sm:$0xff] %vm458_vm2, %v864_v32  ;;  %v873_v30 = vpack.c.bf16 %v864_v32, %v863_v25 }
 0x702   : > { %1747 = vmatpush3.bf16.msra.mxu1 %v873_v30 }
 0x703   : > { %1748 = vmatprep.subr.bf16.mxu1 %v1953_v19 }
 0x706   : > { %1749 = vmatpush3.bf16.msra.mxu1 %v874_v33 }
 0x707   : > { %v2298_v35 = vld [vmem:[%s2141_s17 + $0x40] sm:$0xff]  ;;  %v2301_v36 = vld [vmem:[%s2141_s17 + $0x48] sm:$0xff]  ;;  %v2306_v39 = vld [vmem:[%s2141_s17 + $0x50] sm:$0xff] }
 0x708   : > { %v969_v38 = vpack.c.bf16 %v2301_v36, %v2298_v35  ;;  %v2309_v31 = vld [vmem:[%s2141_s17 + $0x58] sm:$0xff] }
 0x709   : > { %v970_v41 = vpack.c.bf16 %v2309_v31, %v2306_v39 }
 0x70a   : > { %1755 = vmatpush3.bf16.msra.mxu0 %v969_v38 }
 0x70b   : > { %1756 = vmatprep.subr.bf16.mxu0 %v1953_v19 }
 0x70e   : > { %1757 = vmatpush3.bf16.msra.mxu0 %v970_v41 }
 0x70f   : > { %1768 = vmatprep.subr.bf16.mxu0 %v1953_v19 }
 0x711   : > { %1759 = vmatmul.mubr.msk.bf16.vlgmr.msra.gmra.mrb[12].mxu0 %vm349_vm0, %v968_v42 }
 0x712   : > { %1772 = vmatprep.mubr.msk.bf16.mxu0 %vm1954_vm1, %v1953_v19 }
 0x770   : > { %v1198_v4 = vpop.xlane.xlu1 %1197 }
 0x7e4   : > { %v1008_v43 = vpop.f32.mrb[12].mxu0 }
 0x7e5   : > { %1015 = vrot.lane.b32.xlu0 %v1008_v43, %s1962_s21  ;;  %v1760_v44 = vpop.f32.mrb[13].mxu0 }
 0x7e6   : > { %v1011_v45 = vpop.f32.mrb[14].mxu0 }
 0x7e7   : > { %v1761_v46 = vpop.f32.mrb[15].mxu0 }
 0x7e9   : > { %697 = vrot.lane.b32.xlu0 %v2259_v63, %s1958_s24 }
 0x857   : > { %v1016_v47 = vpop.permute.xlu0 %1015 }
 0x858   : > { %v1018_v48 = vsub.f32 %v2111_v24, %v1016_v47 }
 0x85a   : > { %v1023_v49 = vmul.f32 %v2255_v61, %v1018_v48 }
 0x85b   : > { %v698_v50 = vpop.permute.xlu0 %697 }
 0x85c   : > { %v1024_v51 = vpack.c.bf16 %v1023_v49, %v1023_v49  ;;  %v700_v52 = vsel %vm467_vm3, %v695_v5, %v698_v50 }
 0x85d   : > { %v701_v53 = vmul.f32 %v700_v52, %v2259_v63 }
 0x85e   : > { %1042 = vrot.lane.b32.xlu0 %v1024_v51, %s1965_s20 }
 0x85f   : > { %v872_v55 = vpack.c.bf16 %v701_v53, %v701_v53 }
 0x861   : > { %1751 = vmatmul.mubr.msk.bf16.vlgmr.msra.gmra.mrb[16].mxu1 %vm349_vm0, %v872_v55 }
 0x87c   : > { %1025 = vxpose.xlu0.c.b16.start.end [1/1] (short) (narrow) %v968_v42, 32 }
 0x885   : > { %1871 = vset.pattern.permute.xlu0 %v1966_v56 }
 0x889   : > { %1259 = vperm.xlu0 %1871, %v2130_v34  }
 0x88d   : > { %925 = vrot.lane.b32.xlu0 %v2109_v22, %s1965_s20 }
 0x891   : > { %928 = vrot.lane.b32.xlu0 %v2119_v28, %s1964_s25  ;;  %s1653_s25 = sshll.u32 %s2034_s9, 7 }
 0x8d0   : > { %v1043_v57 = vpop.permute.xlu0 %1042 }
 0x8d1   : > { %v1051_v58 = vsel %vm575_vm5, %v1043_v57, 0  ;;  %1812 = vmatprep.subr.msk.bf16.mxu1 %vm575_vm5, %v1043_v57 }
 0x8d2   : > { %1763 = vmatpush3.bf16.msra.mxu1 %v1051_v58 }
 0x8d3   : > { %1776 = vmatprep.subr.bf16.mxu1 %v1953_v19 }
 0x8e2   : > { %v1033_v59 = vpop.trf.xlu0 }
 0x8e3   : > { %1764 = vmatprep.mubr.msk.bf16.mxu1 %vm568_vm4, %v1033_v59 }
 0x8e6   : > { %v1034_v60 = vpop.trf.xlu0 }
 0x8e7   : > { %1765 = vmatmul.mubr.msk.bf16.vlgmr.msra.gmra.mrb[20].mxu1 %vm568_vm4, %v1034_v60 }
 0x8e8   : > { %1780 = vmatprep.mubr.msk.bf16.mxu1 %vm1954_vm1, %v1953_v19 }
 0x908   : > { %v1260_v34 = vpop.permute.xlu0 %1259 }
 0x90c   : > { %v926_v61 = vpop.permute.xlu0 %925 }
 0x910   : > { %v929_v62 = vpop.permute.xlu0 %928 }
 0x911   : > { %v2338_v63 = vsel %vm458_vm2, %v926_v61, %v929_v62 }
 0x912   : > { %936 = vrot.lane.b32.xlu1 %v2338_v63, %s1958_s24 }
 0x916   : > { %1164 = vrot.lane.b32.xlu1 %v2109_v22, %s1956_s22  ;;  %v723_v22 = vsel %vm349_vm0, %v701_v53, 0.0  ;;  %v492_v53 = vsel %vm349_vm0, %v2247_v54, 0.0 }
 0x91a   : > { %1167 = vrot.lane.b32.xlu1 %v2119_v28, %s1965_s20  ;;  %v1199_v28 = vadd.f32 1e-12, %v1198_v4 }
 0x91c   : > { %1878 = vrcp.f32 %v1199_v28 }
 0x926   : > { %v1879_v26 = vpop.eup %1878 }
 0x927   : > { %v1206_v33 = vmul.f32 %v1879_v26, %v2280_v16  ;;  %v1420_v26 = vld [vmem:[%s2509_s4 + $0x28] sm:$0xff] }
 0x934   : > { %v2345_v0 = vpop.f32.mrb[16].mxu1 }
 0x935   : > { %v1752_v1 = vpop.f32.mrb[17].mxu1 }
 0x936   : > { %v915_v2 = vpop.f32.mrb[18].mxu1 }
 0x937   : > { %v1753_v3 = vpop.f32.mrb[19].mxu1 }
 0x984   : > { %v937_v5 = vpop.permute.xlu1 %936 }
 0x988   : > { %v1165_v6 = vpop.permute.xlu1 %1164 }
 0x98c   : > { %v1168_v7 = vpop.permute.xlu1 %1167 }
 0x98d   : > { %v1170_v8 = vsel %vm458_vm2, %v1165_v6, %v1168_v7 }
 0x98e   : > { %1172 = vrot.lane.b32.xlu1 %v1170_v8, %s1957_s23 }
 0x992   : > { %1175 = vrot.lane.b32.xlu1 %v1170_v8, %s1958_s24  ;;  %s1967_s24 = smov [#allocation2]  }
 0x993   : > { %s1892_s10 = sshll.u32 %s1967_s24, 4  ;;  %s1893_s10 = int_to_ptr.vmem [resolvable:$false] %s1892_s10 }
 0x9b6   : > { %724 = vadd.xlane.f32.xlu1 %v723_v22 }
 0x9ba   : > { %v1766_v10 = vpop.f32.mrb[20].mxu1 }
 0x9bb   : > { %v1104_v11 = vadd.f32 %v1766_v10, %v2306_v39  ;;  %v1087_v12 = vpop.f32.mrb[21].mxu1 }
 0x9bc   : > { %v1102_v13 = vadd.f32 %v2298_v35, %v1087_v12  ;;  %v1767_v14 = vpop.f32.mrb[22].mxu1  ;;  %v1207_v35 = vpack.c.bf16 %v1206_v33, %v1206_v33  ;;  %v1421_v33 = vld [vmem:[%s2509_s4 + $0x30] sm:$0xff] }
 0x9bd   : > { %1635 = vst.msk [vmem:[%s2203_s13 + $0x50] sm:$0xff] %vm458_vm2, %v1104_v11  ;;  %v1105_v15 = vadd.f32 %v1767_v14, %v2309_v31  ;;  %v1090_v17 = vpop.f32.mrb[23].mxu1 }
 0x9be   : > { %1633 = vst.msk [vmem:[%s2203_s13 + $0x40] sm:$0xff] %vm458_vm2, %v1102_v13  ;;  %v1103_v18 = vadd.f32 %v2301_v36, %v1090_v17  ;;  %v1416_v17 = vld [vmem:[%s2509_s4 + $0x8] sm:$0xff] }
 0x9bf   : > { %v1113_v20 = vpack.c.bf16 %v1105_v15, %v1104_v11  ;;  %1636 = vst.msk [vmem:[%s2203_s13 + $0x58] sm:$0xff] %vm458_vm2, %v1105_v15  ;;  %v1415_v15 = vld [vmem:[%s2509_s4] sm:$0xff] }
 0x9c0   : > { %v1112_v21 = vpack.c.bf16 %v1103_v18, %v1102_v13  ;;  %1634 = vst.msk [vmem:[%s2203_s13 + $0x48] sm:$0xff] %vm458_vm2, %v1103_v18  ;;  %v1417_v18 = vld [vmem:[%s2509_s4 + $0x10] sm:$0xff] }
 0x9c2   : > { %1769 = vmatpush3.bf16.msra.mxu0 %v1112_v21  ;;  %v1418_v21 = vld [vmem:[%s2509_s4 + $0x18] sm:$0xff] }
 0x9c3   : > { %1770 = vmatprep.subr.bf16.mxu0 %v1953_v19 }
 0x9c6   : > { %1771 = vmatpush3.bf16.msra.mxu0 %v1113_v20  ;;  %v1423_v20 = vpack.c.bf16 %v1416_v17, %v1415_v15 }
 0x9c7   : > { %v2365_v23 = vld [vmem:[%s2141_s17 + $0x60] sm:$0xff]  ;;  %v2368_v25 = vld [vmem:[%s2141_s17 + $0x68] sm:$0xff]  ;;  %v2373_v29 = vld [vmem:[%s2141_s17 + $0x70] sm:$0xff] }
 0x9c8   : > { %v1208_v27 = vpack.c.bf16 %v2368_v25, %v2365_v23  ;;  %v2376_v32 = vld [vmem:[%s2141_s17 + $0x78] sm:$0xff] }
 0x9c9   : > { %v1209_v30 = vpack.c.bf16 %v2376_v32, %v2373_v29 }
 0x9ca   : > { %1777 = vmatpush3.bf16.msra.mxu1 %v1208_v27 }
 0x9cb   : > { %1778 = vmatprep.subr.bf16.mxu1 %v1953_v19 }
 0x9ce   : > { %1779 = vmatpush3.bf16.msra.mxu1 %v1209_v30  ;;  %v1422_v30 = vld [vmem:[%s2509_s4 + $0x38] sm:$0xff] }
 0x9cf   : > { %1790 = vmatprep.subr.bf16.mxu1 %v1953_v19 }
 0x9d1   : > { %1781 = vmatmul.mubr.msk.bf16.vlgmr.msra.gmra.mrb[24].mxu1 %vm349_vm0, %v1207_v35 }
 0x9d2   : > { %1794 = vmatprep.mubr.msk.bf16.mxu1 %vm1954_vm1, %v1953_v19 }
 0xa00   : > { %v1173_v46 = vpop.permute.xlu1 %1172 }
 0xa04   : > { %v1176_v47 = vpop.permute.xlu1 %1175 }
 0xa05   : > { %v1178_v48 = vsel %vm467_vm3, %v1173_v46, %v1176_v47 }
 0xa43   : > { %v725_v51 = vpop.xlane.xlu1 %724 }
 0xa44   : > { %v726_v52 = vadd.f32 1e-12, %v725_v51  ;;  %v1650_v51 = vld [vmem:[%s2510_s5] ss:$0 sm:$0xff] }
 0xa46   : > { %1880 = vrcp.f32 %v726_v52 }
 0xa50   : > { %v1881_v55 = vpop.eup %1880 }
 0xa51   : > { %v918_v56 = vmul.f32 0.25, %v1881_v55 }
 0xa53   : > { %v919_v57 = vmul.f32 %v918_v56, %v2345_v0 }
 0xaa4   : > { %v1247_v36 = vpop.f32.mrb[24].mxu1 }
 0xaa5   : > { %1254 = vrot.lane.b32.xlu0 %v1247_v36, %s1959_s18  ;;  %v1782_v37 = vpop.f32.mrb[25].mxu1 }
 0xaa6   : > { %v1250_v38 = vpop.f32.mrb[26].mxu1 }
 0xaa7   : > { %v1783_v16 = vpop.f32.mrb[27].mxu1 }
 0xaa9   : > { %933 = vrot.lane.b32.xlu0 %v2338_v63, %s1957_s23 }
 0xb17   : > { %v1255_v39 = vpop.permute.xlu0 %1254 }
 0xb18   : > { %v1257_v31 = vsub.f32 %v2111_v24, %v1255_v39  ;;  %v1179_v24 = vmul.f32 %v1178_v48, %v1170_v8 }
 0xb1a   : > { %v1262_v40 = vmul.f32 %v1260_v34, %v1257_v31  ;;  %v1201_v50 = vsel %vm349_vm0, %v1179_v24, 0.0  ;;  %v1350_v14 = vpack.c.bf16 %v1179_v24, %v1179_v24 }
 0xb1b   : > { %v934_v41 = vpop.permute.xlu0 %933 }
 0xb1c   : > { %v1263_v42 = vpack.c.bf16 %v1262_v40, %v1262_v40  ;;  %v939_v43 = vsel %vm467_vm3, %v934_v41, %v937_v5 }
 0xb1d   : > { %v940_v44 = vmul.f32 %v939_v43, %v2338_v63 }
 0xb1e   : > { %1281 = vrot.lane.b32.xlu0 %v1263_v42, %s1956_s22  ;;  %s2462_s22 = scalar_lea.hbm %s2512_s7, %s1653_s25 }
 0xb1f   : > { %v1111_v45 = vpack.c.bf16 %v940_v44, %v940_v44  ;;  %v962_v49 = vsel %vm349_vm0, %v940_v44, 0.0 }
 0xb21   : > { %1773 = vmatmul.mubr.msk.bf16.vlgmr.msra.gmra.mrb[16].mxu0 %vm349_vm0, %v1111_v45 }
 0xb3c   : > { %1264 = vxpose.xlu0.c.b16.start.end [1/1] (short) (narrow) %v1207_v35, 32  ;;  %v1426_v35 = vpack.c.bf16 %v1422_v30, %v1421_v33 }
 0xb4d   : > { %963 = vadd.xlane.f32.xlu0 %v962_v49 }
 0xb51   : > { %1202 = vadd.xlane.f32.xlu0 %v1201_v50 }
 0xb55   : > { %493 = vadd.xlane.f32.xlu0 %v492_v53 }
 0xb6b   : > { %1399 = vrot.lane.b32.xlu0 %v919_v57, %s1961_s19 }
 0xb90   : > { %v1282_v58 = vpop.permute.xlu0 %1281 }
 0xb91   : > { %v1290_v59 = vsel %vm575_vm5, %v1282_v58, 0  ;;  %1813 = vmatprep.subr.msk.bf16.mxu0 %vm575_vm5, %v1282_v58 }
 0xb92   : > { %1785 = vmatpush3.bf16.msra.mxu0 %v1290_v59 }
 0xb93   : > { %1798 = vmatprep.subr.bf16.mxu0 %v1953_v19 }
 0xba2   : > { %v1272_v60 = vpop.trf.xlu0 }
 0xba3   : > { %1786 = vmatprep.mubr.msk.bf16.mxu0 %vm568_vm4, %v1272_v60 }
 0xba6   : > { %v1273_v54 = vpop.trf.xlu0 }
 0xba7   : > { %1787 = vmatmul.mubr.msk.bf16.vlgmr.msra.gmra.mrb[20].mxu0 %vm568_vm4, %v1273_v54 }
 0xba8   : > { %1806 = vmatprep.mubr.msk.bf16.mxu0 %vm1954_vm1, %v1953_v19  ;;  %1799 = vmatpush3.bf16.msra.mxu0 %v1423_v20 }
 0xba9   : > { %1800 = vmatprep.subr.bf16.mxu0 %v1953_v19 }
 0xbda   : > { %v964_v34 = vpop.xlane.xlu0 %963 }
 0xbdb   : > { %v965_v61 = vadd.f32 1e-12, %v964_v34 }
 0xbdd   : > { %1882 = vrcp.f32 %v965_v61 }
 0xbe7   : > { %v1883_v62 = vpop.eup %1882 }
 0xbe8   : > { %v1157_v63 = vmul.f32 0.25, %v1883_v62 }
 0xbf4   : > { %v1151_v0 = vpop.f32.mrb[16].mxu0 }
 0xbf5   : > { %v1158_v1 = vmul.f32 %v1157_v63, %v1151_v0  ;;  %v1774_v2 = vpop.f32.mrb[17].mxu0 }
 0xbf6   : > { %v1154_v3 = vpop.f32.mrb[18].mxu0 }
 0xbf7   : > { %v1775_v4 = vpop.f32.mrb[19].mxu0  ;;  %1403 = vrot.lane.b32.xlu1 %v1158_v1, %s1962_s21 }
 0xc69   : > { %v1404_v46 = vpop.permute.xlu1 %1403 }
 0xc7a   : > { %v1788_v5 = vpop.f32.mrb[20].mxu0 }
 0xc7b   : > { %v1343_v6 = vadd.f32 %v1788_v5, %v2373_v29  ;;  %v1326_v7 = vpop.f32.mrb[21].mxu0  ;;  %v1203_v29 = vpop.xlane.xlu0 %1202 }
 0xc7c   : > { %v1341_v8 = vadd.f32 %v2365_v23, %v1326_v7  ;;  %v1789_v22 = vpop.f32.mrb[22].mxu0  ;;  %v1424_v23 = vpack.c.bf16 %v1418_v21, %v1417_v18 }
 0xc7d   : > { %1647 = vst.msk [vmem:[%s2203_s13 + $0x70] sm:$0xff] %vm458_vm2, %v1343_v6  ;;  %v1344_v28 = vadd.f32 %v1789_v22, %v2376_v32  ;;  %v1329_v10 = vpop.f32.mrb[23].mxu0  ;;  %v1204_v32 = vadd.f32 1e-12, %v1203_v29 }
 0xc7e   : > { %1645 = vst.msk [vmem:[%s2203_s13 + $0x60] sm:$0xff] %vm458_vm2, %v1341_v8  ;;  %v1342_v11 = vadd.f32 %v2368_v25, %v1329_v10  ;;  %v1419_v25 = vld [vmem:[%s2509_s4 + $0x20] sm:$0xff]  ;;  %1801 = vmatpush3.bf16.msra.mxu0 %v1424_v23 }
 0xc7f   : > { %1648 = vst.msk [vmem:[%s2203_s13 + $0x78] sm:$0xff] %vm458_vm2, %v1344_v28  ;;  %v1352_v12 = vpack.c.bf16 %v1344_v28, %v1343_v6  ;;  %v1425_v27 = vpack.c.bf16 %v1420_v26, %v1419_v25  ;;  %1802 = vmatprep.subr.bf16.mxu0 %v1953_v19  ;;  %1884 = vrcp.f32 %v1204_v32  ;;  %v494_v40 = vpop.xlane.xlu0 %493 }
 0xc80   : > { %1646 = vst.msk [vmem:[%s2203_s13 + $0x68] sm:$0xff] %vm458_vm2, %v1342_v11  ;;  %v1351_v13 = vpack.c.bf16 %v1342_v11, %v1341_v8  ;;  %v495_v41 = vadd.f32 1e-12, %v494_v40 }
 0xc82   : > { %1791 = vmatpush3.bf16.msra.mxu1 %v1351_v13  ;;  %1803 = vmatpush3.bf16.msra.mxu0 %v1425_v27  ;;  %1886 = vrcp.f32 %v495_v41 }
 0xc83   : > { %1792 = vmatprep.subr.bf16.mxu1 %v1953_v19  ;;  %1804 = vmatprep.subr.bf16.mxu0 %v1953_v19  ;;  %v1400_v45 = vpop.permute.xlu0 %1399 }
 0xc86   : > { %1793 = vmatpush3.bf16.msra.mxu1 %v1352_v12  ;;  %1805 = vmatpush3.bf16.msra.mxu0 %v1426_v35 }
 0xc89   : > { %1795 = vmatmul.mubr.msk.bf16.vlgmr.msra.gmra.mrb[28].mxu1 %vm349_vm0, %v1350_v14  ;;  %v1885_v36 = vpop.eup %1884 }
 0xc8a   : > { %v1396_v37 = vmul.f32 0.25, %v1885_v36 }
 0xc8c   : > { %v1887_v42 = vpop.eup %1886 }
 0xc8d   : > { %v682_v43 = vmul.f32 0.25, %v1887_v42 }
 0xc8f   : > { %v683_v44 = vmul.f32 %v682_v43, %v2277_v9 }
 0xc91   : > { %v1410_v47 = vsel %vm458_vm2, %v683_v44, %v1400_v45 }
 0xc92   : > { %v1411_v48 = vsel %vm349_vm0, %v1410_v47, %v1404_v46 }
 0xd5c   : > { %v1390_v38 = vpop.f32.mrb[28].mxu1 }
 0xd5d   : > { %v1397_v16 = vmul.f32 %v1396_v37, %v1390_v38  ;;  %v1796_v39 = vpop.f32.mrb[29].mxu1 }
 0xd5e   : > { %v1393_v31 = vpop.f32.mrb[30].mxu1 }
 0xd5f   : > { %1407 = vrot.lane.b32.xlu0 %v1397_v16, %s1959_s18  ;;  %v1797_v19 = vpop.f32.mrb[31].mxu1  ;;  %s310_s18 = sand.u32 1, %s1942_s28  }
 0xd60   : > { %s1601_s17 = sshll.u32 %s310_s18, 3  ;;  %s1480_s9 = scalar_lea.sflag [#allocation3], %s310_s18 }
 0xd61   : > { %s312_s26 = scalar_lea.vmem [#allocation2], %s1601_s17  ;;  %s1894_s17 = scalar_lea.vmem %s1893_s10, 256 }
 0xd62   : > { %s1498_s12 = sshll.u32 %s312_s26, 4  ;;  %s2464_s12 = int_to_ptr.vmem [resolvable:$true] %s1498_s12 }
 0xd63   : > { %s1888_s23 = scalar_lea.vmem %s2464_s12, 128  ;;  %p1895_p0 = scmp.lt.s32.totalorder %s2464_s12, %s1893_s10 }
 0xd64   : > { %p1889_p11 = scmp.ne.s32.totalorder %s2464_s12, %s1888_s23  ;;  %p1896_p1 = scmp.lt.s32.totalorder %s1894_s17, %s1888_s23 }
 0xd66   : > { %p1890_p12 = pnand %p1889_p11, %p2051_p5  ;;  %p1897_p2 = por %p1896_p1, %p1895_p0 }
 0xd68   : > { %p1891_p13 = pneg %p1890_p12 }
 0xd6a   : > { %p1898_p3 = pnand %p1897_p2, %p1891_p13 }
 0xdd1   : > { %v1408_v49 = vpop.permute.xlu0 %1407 }
 0xdd2   : > { %v1413_v24 = vsel %vm1412_vm6, %v1411_v48, %v1408_v49 }
 0xdd3   : > { %v1414_v50 = vpack.c.bf16 %v1413_v24, %v1413_v24 }
 0xdd5   : > { %1807 = vmatmul.mubr.msk.bf16.vlgmr.msra.gmra.mrb[24].mxu0 %vm1434_vm7, %v1414_v50 }
 0xea8   : > { %v1472_v9 = vpop.f32.mrb[24].mxu0 }
 0xea9   : > { %v1473_v52 = vadd.f32 %v1650_v51, %v1472_v9  ;;  %v1808_v53 = vpop.f32.mrb[25].mxu0 }
 0xeaa   : > { %v1475_v55 = vpop.f32.mrb[26].mxu0 }
 0xeab   : > { %v1809_v56 = vpop.f32.mrb[27].mxu0  ;;  %1478 = vst.msk [vmem:[%s312_s26] sm:$0xff] %vm349_vm0, %v1473_v52 }
 0xeac   : > { %1901 = shalt.err (!%p1898_p3)
}
 0xead   : > { %s1902_s18 = scalar_lea.hbm %s2462_s22, 128  ;;  %s1906_s25 = scalar_lea.hbm %s2512_s7, 256 }
 0xeae   : > { %p1903_p4 = scmp.ne.s32.totalorder %s2462_s22, %s1902_s18  ;;  %p1907_p9 = scmp.lt.u32.totalorder %s2462_s22, %s2512_s7 }
 0xeaf   : > { %p1908_p10 = scmp.lt.u32.totalorder %s1906_s25, %s1902_s18  ;;  %p1910_p12 = scmp.lt.u32.totalorder %s1902_s18, %s2462_s22 }
 0xeb0   : > { %p1904_p7 = pnand %p1903_p4, %p2051_p5 }
 0xeb1   : > { %p1909_p11 = por %p1908_p10, %p1907_p9 }
 0xeb2   : > { %p1905_p8 = pneg %p1904_p7 }
 0xeb3   : > { %p1911_p13 = por %p1910_p12, %p1909_p11 }
 0xeb5   : > { %p1912_p0 = pnand %p1911_p13, %p1905_p8 }
 0xeb7   : > { %1915 = shalt.err (!%p1912_p0)
}
 0xeb8   : > { %1814 = dma.vmem_to_hbm [thread:$0]  (%p2051_p5), %s2464_s12, 128, %s2462_s22, %s1480_s9  }
 0xeb9 PF: > { %p1820_p1 = scmp.ge.s32.totalorder %s1950_s30, 2  ;;  %s1513_s20 = sand.u32 1, %s1938_s27  }
 0xeba   : > { %s1514_s23 = scalar_lea.sflag [#allocation3], %s1513_s20 }
 0xebb   : > { %p1817_p2 = pnand %p1820_p1, %p2055_p6 }
 0xebd   : > { %1933 = dma.done.wait (!%p1817_p2), %s1514_s23, 128  }
 0xebe   : > { %1935 = vsyncadd (!%p1817_p2), %s1514_s23, 4294967168  ;;  %p19_p3 = scmp.ge.s32.totalorder %s2038_s11, 4   ;;  %s2516_s27 = smov %s1942_s28 }
 0xebf   : > { %s2517_s28 = smov %s1946_s29  ;;  %s2518_s29 = smov %s2049_s14 }
 0xec0   : > { %s2519_s30 = smov %s2038_s11  ;;  %21 = sbr.rel (!%p19_p3) target bundleno = 3 (0x3), region = 104 }
 0xec7   :  { %1527 = vsyncpa [#allocation3], 1 }
 0xec8   :  { %1529 = vsyncpa [#allocation3 + $0x1], 1 }

</bundles_post_ra>
